<compile_context>
chip_gen: v6e
topology: v6e:2x2x1
jax: 0.10.0
libtpu: 0.0.40
codegen_flags: <defaults>
</compile_context>

<pallas_src>
import jax
import jax.numpy as jnp
from jax.experimental import pallas as pl
from jax.experimental.pallas import tpu as pltpu


# ---------------------------------------------------------------------------
# Packed per-channel parameter column (BN scale/shift + conv biases)
# ---------------------------------------------------------------------------

_VEC_ORDER = (
    "g_bn1_scale", "g_bn1_shift", "g_b1", "g_bn2_scale", "g_bn2_shift", "g_b2",
    "r_bn1_scale", "r_bn1_shift", "r_b1", "r_bn2_scale", "r_bn2_shift", "r_b2",
)


def _vec_layout(sizes):
    """Sublane-aligned (multiple-of-8) offsets for the packed parameter column."""
    offsets = {}
    off = 0
    for name in _VEC_ORDER:
        n = sizes[name]
        offsets[name] = (off, n)
        off += n + (-n % 8)
    return offsets, off


# ---------------------------------------------------------------------------
# Fused TIRG kernel
# ---------------------------------------------------------------------------

def _make_tirg_kernel(H, W, vec_off):
    HW = H * W

    def shifted_taps(a, left_ok, right_ok):
        """im2col for a 3x3 / pad=1 conv on a (C, H*W) activation -> (9*C, H*W).

        Zero padding is realized by padding the flattened spatial axis with
        W+1 zeros on each side (covers top/bottom row overflow); the column
        wrap-around of the +/-1 horizontal taps is killed with lane masks.
        """
        C = a.shape[0]
        zpad = jnp.zeros((C, W + 1), a.dtype)
        ap = jnp.concatenate([zpad, a, zpad], axis=-1)      # (C, HW + 2W + 2)
        taps = []
        for ky in range(3):
            for kx in range(3):
                s = (ky - 1) * W + (kx - 1)                 # flat shift of this tap
                v = ap[:, (W + 1) + s:(W + 1) + s + HW]     # v[:, p] = a[:, p+s]
                if kx == 0:                                 # tap reads column w-1
                    v = jnp.where(left_ok, v, 0.0)
                elif kx == 2:                               # tap reads column w+1
                    v = jnp.where(right_ok, v, 0.0)
                taps.append(v)
        return jnp.concatenate(taps, axis=0)                # (9*C, HW)

    def kernel(wmix_ref, ximg_ref, xtxt_ref, vec_ref,
               g_w1_ref, g_w2_ref, r_w1_ref, r_w2_ref,
               y_ref, gate_ref):
        vecs = vec_ref[...]                                 # (n_vec, 1)

        def seg(name):                                      # static 8-aligned slice
            o, n = vec_off[name]
            return vecs[o:o + n]

        x_img = ximg_ref[0]                                 # (Cimg, HW)
        x_txt = xtxt_ref[0]                                 # (Ctxt, HW)
        x = jnp.concatenate([x_img, x_txt], axis=0)         # (Cin, HW)

        col = jax.lax.broadcasted_iota(jnp.int32, (1, HW), 1) % W
        left_ok = col != 0
        right_ok = col != (W - 1)

        def conv_branch(s1, t1, w1, b1, s2, t2, w2, b2):
            # Norm2d(eval) + ReLU -> conv3x3 -> Norm2d(eval) + ReLU -> conv3x3
            a = jnp.maximum(x * s1 + t1, 0.0)                              # (Cin, HW)
            h = jnp.dot(w1, shifted_taps(a, left_ok, right_ok),
                        preferred_element_type=jnp.float32) + b1           # (hidden, HW)
            a = jnp.maximum(h * s2 + t2, 0.0)
            return jnp.dot(w2, shifted_taps(a, left_ok, right_ok),
                           preferred_element_type=jnp.float32) + b2        # (Cout, HW)

        gate_logits = conv_branch(seg("g_bn1_scale"), seg("g_bn1_shift"),
                                  g_w1_ref[...], seg("g_b1"),
                                  seg("g_bn2_scale"), seg("g_bn2_shift"),
                                  g_w2_ref[...], seg("g_b2"))
        res = conv_branch(seg("r_bn1_scale"), seg("r_bn1_shift"),
                          r_w1_ref[...], seg("r_b1"),
                          seg("r_bn2_scale"), seg("r_bn2_shift"),
                          r_w2_ref[...], seg("r_b2"))

        gate = jax.nn.sigmoid(gate_logits)                  # (1, HW)
        w_gate = wmix_ref[0]                                # SMEM scalars
        w_res = wmix_ref[1]
        y = w_gate * (gate * x_img) + w_res * res           # (Cimg, HW)

        y_ref[0] = y.astype(y_ref.dtype)
        gate_ref[0] = gate.astype(gate_ref.dtype)

    return kernel


# ---------------------------------------------------------------------------
# Wrapper
# ---------------------------------------------------------------------------

def tirg_forward(params, x_img_nchw, x_txt_nchw):
    B, Cimg, H, W = x_img_nchw.shape
    Ctxt = x_txt_nchw.shape[1]
    Cin = Cimg + Ctxt
    hidden = params["g_w1"].shape[-1]
    gate_dim = params["g_w2"].shape[-1]
    HW = H * W

    # NCHW -> (B, C, H*W): pure reshape, no HBM transpose.
    x_img = x_img_nchw.reshape(B, Cimg, HW)
    x_txt = x_txt_nchw.reshape(B, Ctxt, HW)

    def w_mat(w_hwio):
        # (3, 3, Cin, Cout) HWIO -> (Cout, 9*Cin), tap-major / Cin-minor.
        cout = w_hwio.shape[-1]
        return jnp.transpose(w_hwio, (3, 0, 1, 2)).reshape(cout, -1)

    # Pack every per-channel vector into one sublane-aligned column (1 DMA).
    sizes = {
        "g_bn1_scale": Cin, "g_bn1_shift": Cin, "g_b1": hidden,
        "g_bn2_scale": hidden, "g_bn2_shift": hidden, "g_b2": gate_dim,
        "r_bn1_scale": Cin, "r_bn1_shift": Cin, "r_b1": hidden,
        "r_bn2_scale": hidden, "r_bn2_shift": hidden, "r_b2": Cimg,
    }
    vec_off, n_vec = _vec_layout(sizes)
    parts = []
    for name in _VEC_ORDER:
        v = params[name].astype(jnp.float32).reshape(-1, 1)
        pad = -v.shape[0] % 8
        if pad:
            v = jnp.concatenate([v, jnp.zeros((pad, 1), jnp.float32)], axis=0)
        parts.append(v)
    vec_pack = jnp.concatenate(parts, axis=0)               # (n_vec, 1)
    assert vec_pack.shape[0] == n_vec

    wmix = jnp.stack([params["w_gate"], params["w_res"]]).astype(jnp.float32)

    kernel = _make_tirg_kernel(H, W, vec_off)

    def const_spec(shape):
        return pl.BlockSpec(shape, lambda b: (0,) * len(shape))

    def batched(c):
        return pl.BlockSpec((1, c, HW), lambda b: (b, 0, 0))

    y, gate = pl.pallas_call(
        kernel,
        out_shape=(jax.ShapeDtypeStruct((B, Cimg, HW), x_img.dtype),
                   jax.ShapeDtypeStruct((B, gate_dim, HW), x_img.dtype)),
        grid=(B,),
        in_specs=[
            pl.BlockSpec(memory_space=pltpu.MemorySpace.SMEM),   # wmix (2,)
            batched(Cimg),                                       # x_img
            batched(Ctxt),                                       # x_txt
            const_spec((n_vec, 1)),                              # packed vectors
            const_spec((hidden, 9 * Cin)),                       # g_w1
            const_spec((gate_dim, 9 * hidden)),                  # g_w2
            const_spec((hidden, 9 * Cin)),                       # r_w1
            const_spec((Cimg, 9 * hidden)),                      # r_w2
        ],
        out_specs=(batched(Cimg), batched(gate_dim)),
        compiler_params=pltpu.CompilerParams(dimension_semantics=("parallel",)),
    )(
        wmix, x_img, x_txt, vec_pack,
        w_mat(params["g_w1"]), w_mat(params["g_w2"]),
        w_mat(params["r_w1"]), w_mat(params["r_w2"]),
    )

    return y.reshape(B, Cimg, H, W), gate.reshape(B, gate_dim, H, W)


# ---------------------------------------------------------------------------
# Pure-JAX reference (numerical check)
# ---------------------------------------------------------------------------

def _conv_ref(x, w, b):
    out = jax.lax.conv_general_dilated(
        x, w, window_strides=(1, 1), padding=((1, 1), (1, 1)),
        dimension_numbers=("NHWC", "HWIO", "NHWC"),
        precision=jax.lax.Precision.HIGHEST)
    return out + b.reshape(1, 1, 1, -1)


def tirg_reference(params, x_img_nchw, x_txt_nchw):
    x_img = jnp.transpose(x_img_nchw, (0, 2, 3, 1))
    x_txt = jnp.transpose(x_txt_nchw, (0, 2, 3, 1))
    x = jnp.concatenate([x_img, x_txt], axis=-1)

    def bnr(v, s, t):
        return jnp.maximum(v * s.reshape(1, 1, 1, -1) + t.reshape(1, 1, 1, -1), 0.0)

    a = bnr(x, params["g_bn1_scale"], params["g_bn1_shift"])
    h = _conv_ref(a, params["g_w1"], params["g_b1"])
    a = bnr(h, params["g_bn2_scale"], params["g_bn2_shift"])
    gate = jax.nn.sigmoid(_conv_ref(a, params["g_w2"], params["g_b2"]))

    a = bnr(x, params["r_bn1_scale"], params["r_bn1_shift"])
    h = _conv_ref(a, params["r_w1"], params["r_b1"])
    a = bnr(h, params["r_bn2_scale"], params["r_bn2_shift"])
    res = _conv_ref(a, params["r_w2"], params["r_b2"])

    y = params["w_gate"] * (gate * x_img) + params["w_res"] * res
    return jnp.transpose(y, (0, 3, 1, 2)), jnp.transpose(gate, (0, 3, 1, 2))


# ---------------------------------------------------------------------------
# Deterministic parameter init
# ---------------------------------------------------------------------------

def _bn_fold(key, C):
    k1, k2, k3, k4 = jax.random.split(key, 4)
    gamma = 1.0 + 0.1 * jax.random.normal(k1, (C,), jnp.float32)
    beta = 0.1 * jax.random.normal(k2, (C,), jnp.float32)
    mean = 0.1 * jax.random.normal(k3, (C,), jnp.float32)
    var = jnp.abs(jax.random.normal(k4, (C,), jnp.float32)) + 0.5
    eps = 1e-5
    scale = gamma / jnp.sqrt(var + eps)
    shift = beta - mean * scale
    return scale, shift


def make_params(key, image_dim, text_dim, hidden_dim):
    in_ch = image_dim + text_dim
    gate_dim = 1  # multi_channel_gate=False
    ks = jax.random.split(key, 12)
    p = {}
    p["g_bn1_scale"], p["g_bn1_shift"] = _bn_fold(ks[0], in_ch)
    p["g_w1"] = 0.1 * jax.random.normal(ks[1], (3, 3, in_ch, hidden_dim), jnp.float32)
    p["g_b1"] = 0.01 * jax.random.normal(ks[2], (hidden_dim,), jnp.float32)
    p["g_bn2_scale"], p["g_bn2_shift"] = _bn_fold(ks[3], hidden_dim)
    p["g_w2"] = 0.1 * jax.random.normal(ks[4], (3, 3, hidden_dim, gate_dim), jnp.float32)
    p["g_b2"] = 0.01 * jax.random.normal(ks[5], (gate_dim,), jnp.float32)

    p["r_bn1_scale"], p["r_bn1_shift"] = _bn_fold(ks[6], in_ch)
    p["r_w1"] = 0.1 * jax.random.normal(ks[7], (3, 3, in_ch, hidden_dim), jnp.float32)
    p["r_b1"] = 0.01 * jax.random.normal(ks[8], (hidden_dim,), jnp.float32)
    p["r_bn2_scale"], p["r_bn2_shift"] = _bn_fold(ks[9], hidden_dim)
    p["r_w2"] = 0.1 * jax.random.normal(ks[10], (3, 3, hidden_dim, image_dim), jnp.float32)
    p["r_b2"] = 0.01 * jax.random.normal(ks[11], (image_dim,), jnp.float32)

    # TIRG learnable mixing weights (module init is ones/zeros; use a
    # non-zero w_res here so the residual branch is exercised by the check).
    p["w_gate"] = jnp.asarray(1.0, jnp.float32)
    p["w_res"] = jnp.asarray(0.7, jnp.float32)
    return p


# ---------------------------------------------------------------------------
# Main
# ---------------------------------------------------------------------------

if __name__ == "__main__":
    B, image_dim, text_dim, hidden_dim, H, W = 2, 4, 4, 32, 16, 16

    key = jax.random.PRNGKey(0)
    k_param, k_img, k_txt = jax.random.split(key, 3)
    params = make_params(k_param, image_dim, text_dim, hidden_dim)

    x_img = jax.random.normal(k_img, (B, image_dim, H, W), jnp.float32)   # NCHW
    x_txt = jax.random.normal(k_txt, (B, text_dim, H, W), jnp.float32)    # NCHW

    y, gate = jax.jit(tirg_forward)(params, x_img, x_txt)
    y = jax.block_until_ready(y)
    gate = jax.block_until_ready(gate)

    y_ref, gate_ref = tirg_reference(params, x_img, x_txt)
    assert y.shape == (B, image_dim, H, W)
    assert gate.shape == (B, 1, H, W)
    assert jnp.allclose(y, y_ref, rtol=1e-3, atol=1e-3), (
        "y mismatch", float(jnp.max(jnp.abs(y - y_ref))))
    assert jnp.allclose(gate, gate_ref, rtol=1e-3, atol=1e-3), (
        "gate mismatch", float(jnp.max(jnp.abs(gate - gate_ref))))

    # TODO(synk): sta='concat'/'replace' (SourceTargetAttention), use_relnet
    # (RelationalNetworkLite) and res_mask_post branches are config-off in the
    # default TIRG setup and are not implemented here.

    print("KERNEL_OK")
</pallas_src>

<mosaic_0001>
module attributes {stable_mosaic.version = 11 : i64} {
  func.func @kernel(%arg0: i32, %arg1: memref<2xf32, #tpu.memory_space<smem>>, %arg2: memref<1x4x256xf32, #tpu.memory_space<vmem>>, %arg3: memref<1x4x256xf32, #tpu.memory_space<vmem>>, %arg4: memref<240x1xf32, #tpu.memory_space<vmem>>, %arg5: memref<32x72xf32, #tpu.memory_space<vmem>>, %arg6: memref<1x288xf32, #tpu.memory_space<vmem>>, %arg7: memref<32x72xf32, #tpu.memory_space<vmem>>, %arg8: memref<4x288xf32, #tpu.memory_space<vmem>>, %arg9: memref<1x4x256xf32, #tpu.memory_space<vmem>>, %arg10: memref<1x1x256xf32, #tpu.memory_space<vmem>>) attributes {dimension_semantics = [#tpu.dimension_semantics<parallel>], iteration_bounds = array<i64: 2>, scalar_prefetch = 0 : i64, scratch_operands = 0 : i64, tpu.core_type = #tpu.core_type<tc>, window_params = [{transform_indices = @transform_0, window_bounds = array<i64: 2>}, {transform_indices = @transform_1, window_bounds = array<i64: 1, 4, 256>}, {transform_indices = @transform_2, window_bounds = array<i64: 1, 4, 256>}, {pipeline_mode = #tpu.pipeline_mode<synchronous>, transform_indices = @transform_3, window_bounds = array<i64: 240, 1>}, {pipeline_mode = #tpu.pipeline_mode<synchronous>, transform_indices = @transform_4, window_bounds = array<i64: 32, 72>}, {pipeline_mode = #tpu.pipeline_mode<synchronous>, transform_indices = @transform_5, window_bounds = array<i64: 1, 288>}, {pipeline_mode = #tpu.pipeline_mode<synchronous>, transform_indices = @transform_6, window_bounds = array<i64: 32, 72>}, {pipeline_mode = #tpu.pipeline_mode<synchronous>, transform_indices = @transform_7, window_bounds = array<i64: 4, 288>}, {transform_indices = @transform_8, window_bounds = array<i64: 1, 4, 256>}, {transform_indices = @transform_9, window_bounds = array<i64: 1, 1, 256>}]} {
    %c0 = arith.constant 0 : index
    %c0_0 = arith.constant 0 : index
    %0 = vector.load %arg4[%c0, %c0_0] : memref<240x1xf32, #tpu.memory_space<vmem>>, vector<240x1xf32>
    %c0_1 = arith.constant 0 : index
    %c0_2 = arith.constant 0 : index
    %c0_3 = arith.constant 0 : index
    %1 = vector.load %arg2[%c0_1, %c0_2, %c0_3] : memref<1x4x256xf32, #tpu.memory_space<vmem>>, vector<1x4x256xf32>
    %2 = vector.shape_cast %1 : vector<1x4x256xf32> to vector<4x256xf32>
    %c0_4 = arith.constant 0 : index
    %c0_5 = arith.constant 0 : index
    %c0_6 = arith.constant 0 : index
    %3 = vector.load %arg3[%c0_4, %c0_5, %c0_6] : memref<1x4x256xf32, #tpu.memory_space<vmem>>, vector<1x4x256xf32>
    %4 = vector.shape_cast %3 : vector<1x4x256xf32> to vector<4x256xf32>
    %5 = tpu.concatenate %2, %4 in 0 : vector<4x256xf32>, vector<4x256xf32> -> vector<8x256xf32>
    %6 = tpu.iota {dimensions = array<i32: 1>} : vector<1x256xi32>
    %c16_i32 = arith.constant 16 : i32
    %c0_i32 = arith.constant 0 : i32
    %7 = arith.cmpi eq, %c16_i32, %c0_i32 : i32
    %c1_i32 = arith.constant 1 : i32
    %8 = arith.select %7, %c1_i32, %c16_i32 : i32
    %9 = vector.broadcast %8 : i32 to vector<1x256xi32>
    %10 = arith.remsi %6, %9 : vector<1x256xi32>
    %c0_i32_7 = arith.constant 0 : i32
    %11 = vector.broadcast %c0_i32_7 : i32 to vector<1x256xi32>
    %12 = arith.cmpi ne, %10, %11 : vector<1x256xi32>
    %c0_i32_8 = arith.constant 0 : i32
    %13 = vector.broadcast %c0_i32_8 : i32 to vector<1x256xi32>
    %14 = arith.cmpi slt, %10, %13 : vector<1x256xi32>
    %c0_i32_9 = arith.constant 0 : i32
    %15 = arith.cmpi slt, %8, %c0_i32_9 : i32
    %16 = vector.broadcast %15 : i1 to vector<1x256xi1>
    %17 = vector.broadcast %16 : vector<1x256xi1> to vector<1x256xi1>
    %18 = arith.xori %14, %17 : vector<1x256xi1>
    %19 = arith.andi %18, %12 : vector<1x256xi1>
    %20 = vector.broadcast %8 : i32 to vector<1x256xi32>
    %21 = arith.addi %10, %20 : vector<1x256xi32>
    %22 = arith.select %19, %21, %10 : vector<1x256xi1>, vector<1x256xi32>
    %c0_i32_10 = arith.constant 0 : i32
    %23 = vector.broadcast %c0_i32_10 : i32 to vector<1x256xi32>
    %24 = arith.cmpi ne, %22, %23 : vector<1x256xi32>
    %c15_i32 = arith.constant 15 : i32
    %25 = vector.broadcast %c15_i32 : i32 to vector<1x256xi32>
    %26 = arith.cmpi ne, %22, %25 : vector<1x256xi32>
    %27 = vector.extract_strided_slice %0 {offsets = [0, 0], sizes = [8, 1], strides = [1, 1]} : vector<240x1xf32> to vector<8x1xf32>
    %28 = vector.extract_strided_slice %0 {offsets = [8, 0], sizes = [8, 1], strides = [1, 1]} : vector<240x1xf32> to vector<8x1xf32>
    %c0_11 = arith.constant 0 : index
    %c0_12 = arith.constant 0 : index
    %29 = vector.load %arg5[%c0_11, %c0_12] : memref<32x72xf32, #tpu.memory_space<vmem>>, vector<32x72xf32>
    %30 = vector.extract_strided_slice %0 {offsets = [16, 0], sizes = [32, 1], strides = [1, 1]} : vector<240x1xf32> to vector<32x1xf32>
    %31 = vector.extract_strided_slice %0 {offsets = [48, 0], sizes = [32, 1], strides = [1, 1]} : vector<240x1xf32> to vector<32x1xf32>
    %32 = vector.extract_strided_slice %0 {offsets = [80, 0], sizes = [32, 1], strides = [1, 1]} : vector<240x1xf32> to vector<32x1xf32>
    %c0_13 = arith.constant 0 : index
    %c0_14 = arith.constant 0 : index
    %33 = vector.load %arg6[%c0_13, %c0_14] : memref<1x288xf32, #tpu.memory_space<vmem>>, vector<1x288xf32>
    %34 = vector.extract_strided_slice %0 {offsets = [112, 0], sizes = [1, 1], strides = [1, 1]} : vector<240x1xf32> to vector<1x1xf32>
    %35 = vector.broadcast %27 : vector<8x1xf32> to vector<8x256xf32>
    %36 = arith.mulf %5, %35 : vector<8x256xf32>
    %37 = vector.broadcast %28 : vector<8x1xf32> to vector<8x256xf32>
    %38 = arith.addf %36, %37 : vector<8x256xf32>
    %cst = arith.constant 0.000000e+00 : f32
    %39 = vector.broadcast %cst : f32 to vector<8x256xf32>
    %40 = arith.maximumf %38, %39 : vector<8x256xf32>
    %cst_15 = arith.constant 0.000000e+00 : f32
    %41 = vector.broadcast %cst_15 : f32 to vector<8x17xf32>
    %42 = tpu.concatenate %41, %40, %41 in 1 : vector<8x17xf32>, vector<8x256xf32>, vector<8x17xf32> -> vector<8x290xf32>
    %43 = vector.extract_strided_slice %42 {offsets = [0, 0], sizes = [8, 256], strides = [1, 1]} : vector<8x290xf32> to vector<8x256xf32>
    %cst_16 = arith.constant 0.000000e+00 : f32
    %44 = vector.shape_cast %24 : vector<1x256xi1> to vector<1x256xi1>
    %45 = vector.broadcast %44 : vector<1x256xi1> to vector<8x256xi1>
    %46 = vector.broadcast %cst_16 : f32 to vector<8x256xf32>
    %47 = arith.select %45, %43, %46 : vector<8x256xi1>, vector<8x256xf32>
    %48 = vector.extract_strided_slice %42 {offsets = [0, 1], sizes = [8, 256], strides = [1, 1]} : vector<8x290xf32> to vector<8x256xf32>
    %49 = vector.extract_strided_slice %42 {offsets = [0, 2], sizes = [8, 256], strides = [1, 1]} : vector<8x290xf32> to vector<8x256xf32>
    %cst_17 = arith.constant 0.000000e+00 : f32
    %50 = vector.shape_cast %26 : vector<1x256xi1> to vector<1x256xi1>
    %51 = vector.broadcast %50 : vector<1x256xi1> to vector<8x256xi1>
    %52 = vector.broadcast %cst_17 : f32 to vector<8x256xf32>
    %53 = arith.select %51, %49, %52 : vector<8x256xi1>, vector<8x256xf32>
    %54 = vector.extract_strided_slice %42 {offsets = [0, 16], sizes = [8, 256], strides = [1, 1]} : vector<8x290xf32> to vector<8x256xf32>
    %cst_18 = arith.constant 0.000000e+00 : f32
    %55 = vector.shape_cast %24 : vector<1x256xi1> to vector<1x256xi1>
    %56 = vector.broadcast %55 : vector<1x256xi1> to vector<8x256xi1>
    %57 = vector.broadcast %cst_18 : f32 to vector<8x256xf32>
    %58 = arith.select %56, %54, %57 : vector<8x256xi1>, vector<8x256xf32>
    %59 = vector.extract_strided_slice %42 {offsets = [0, 17], sizes = [8, 256], strides = [1, 1]} : vector<8x290xf32> to vector<8x256xf32>
    %60 = vector.extract_strided_slice %42 {offsets = [0, 18], sizes = [8, 256], strides = [1, 1]} : vector<8x290xf32> to vector<8x256xf32>
    %cst_19 = arith.constant 0.000000e+00 : f32
    %61 = vector.shape_cast %26 : vector<1x256xi1> to vector<1x256xi1>
    %62 = vector.broadcast %61 : vector<1x256xi1> to vector<8x256xi1>
    %63 = vector.broadcast %cst_19 : f32 to vector<8x256xf32>
    %64 = arith.select %62, %60, %63 : vector<8x256xi1>, vector<8x256xf32>
    %65 = vector.extract_strided_slice %42 {offsets = [0, 32], sizes = [8, 256], strides = [1, 1]} : vector<8x290xf32> to vector<8x256xf32>
    %cst_20 = arith.constant 0.000000e+00 : f32
    %66 = vector.shape_cast %24 : vector<1x256xi1> to vector<1x256xi1>
    %67 = vector.broadcast %66 : vector<1x256xi1> to vector<8x256xi1>
    %68 = vector.broadcast %cst_20 : f32 to vector<8x256xf32>
    %69 = arith.select %67, %65, %68 : vector<8x256xi1>, vector<8x256xf32>
    %70 = vector.extract_strided_slice %42 {offsets = [0, 33], sizes = [8, 256], strides = [1, 1]} : vector<8x290xf32> to vector<8x256xf32>
    %71 = vector.extract_strided_slice %42 {offsets = [0, 34], sizes = [8, 256], strides = [1, 1]} : vector<8x290xf32> to vector<8x256xf32>
    %cst_21 = arith.constant 0.000000e+00 : f32
    %72 = vector.shape_cast %26 : vector<1x256xi1> to vector<1x256xi1>
    %73 = vector.broadcast %72 : vector<1x256xi1> to vector<8x256xi1>
    %74 = vector.broadcast %cst_21 : f32 to vector<8x256xf32>
    %75 = arith.select %73, %71, %74 : vector<8x256xi1>, vector<8x256xf32>
    %76 = tpu.concatenate %47, %48, %53, %58, %59, %64, %69, %70, %75 in 0 : vector<8x256xf32>, vector<8x256xf32>, vector<8x256xf32>, vector<8x256xf32>, vector<8x256xf32>, vector<8x256xf32>, vector<8x256xf32>, vector<8x256xf32>, vector<8x256xf32> -> vector<72x256xf32>
    %cst_22 = arith.constant dense<0.000000e+00> : vector<32x256xf32>
    %77 = tpu.matmul %29, %76, %cst_22 {dimension_numbers = #tpu.dot_dimension_numbers<[1], [0], [0], [1], [0, 0, 1, 1], [], []>} : vector<32x72xf32>, vector<72x256xf32>, vector<32x256xf32> -> vector<32x256xf32>
    %78 = vector.broadcast %30 : vector<32x1xf32> to vector<32x256xf32>
    %79 = arith.addf %77, %78 : vector<32x256xf32>
    %80 = vector.broadcast %31 : vector<32x1xf32> to vector<32x256xf32>
    %81 = arith.mulf %79, %80 : vector<32x256xf32>
    %82 = vector.broadcast %32 : vector<32x1xf32> to vector<32x256xf32>
    %83 = arith.addf %81, %82 : vector<32x256xf32>
    %cst_23 = arith.constant 0.000000e+00 : f32
    %84 = vector.broadcast %cst_23 : f32 to vector<32x256xf32>
    %85 = arith.maximumf %83, %84 : vector<32x256xf32>
    %cst_24 = arith.constant 0.000000e+00 : f32
    %86 = vector.broadcast %cst_24 : f32 to vector<32x17xf32>
    %87 = tpu.concatenate %86, %85, %86 in 1 : vector<32x17xf32>, vector<32x256xf32>, vector<32x17xf32> -> vector<32x290xf32>
    %88 = vector.extract_strided_slice %87 {offsets = [0, 0], sizes = [32, 256], strides = [1, 1]} : vector<32x290xf32> to vector<32x256xf32>
    %cst_25 = arith.constant 0.000000e+00 : f32
    %89 = vector.shape_cast %24 : vector<1x256xi1> to vector<1x256xi1>
    %90 = vector.broadcast %89 : vector<1x256xi1> to vector<32x256xi1>
    %91 = vector.broadcast %cst_25 : f32 to vector<32x256xf32>
    %92 = arith.select %90, %88, %91 : vector<32x256xi1>, vector<32x256xf32>
    %93 = vector.extract_strided_slice %87 {offsets = [0, 1], sizes = [32, 256], strides = [1, 1]} : vector<32x290xf32> to vector<32x256xf32>
    %94 = vector.extract_strided_slice %87 {offsets = [0, 2], sizes = [32, 256], strides = [1, 1]} : vector<32x290xf32> to vector<32x256xf32>
    %cst_26 = arith.constant 0.000000e+00 : f32
    %95 = vector.shape_cast %26 : vector<1x256xi1> to vector<1x256xi1>
    %96 = vector.broadcast %95 : vector<1x256xi1> to vector<32x256xi1>
    %97 = vector.broadcast %cst_26 : f32 to vector<32x256xf32>
    %98 = arith.select %96, %94, %97 : vector<32x256xi1>, vector<32x256xf32>
    %99 = vector.extract_strided_slice %87 {offsets = [0, 16], sizes = [32, 256], strides = [1, 1]} : vector<32x290xf32> to vector<32x256xf32>
    %cst_27 = arith.constant 0.000000e+00 : f32
    %100 = vector.shape_cast %24 : vector<1x256xi1> to vector<1x256xi1>
    %101 = vector.broadcast %100 : vector<1x256xi1> to vector<32x256xi1>
    %102 = vector.broadcast %cst_27 : f32 to vector<32x256xf32>
    %103 = arith.select %101, %99, %102 : vector<32x256xi1>, vector<32x256xf32>
    %104 = vector.extract_strided_slice %87 {offsets = [0, 17], sizes = [32, 256], strides = [1, 1]} : vector<32x290xf32> to vector<32x256xf32>
    %105 = vector.extract_strided_slice %87 {offsets = [0, 18], sizes = [32, 256], strides = [1, 1]} : vector<32x290xf32> to vector<32x256xf32>
    %cst_28 = arith.constant 0.000000e+00 : f32
    %106 = vector.shape_cast %26 : vector<1x256xi1> to vector<1x256xi1>
    %107 = vector.broadcast %106 : vector<1x256xi1> to vector<32x256xi1>
    %108 = vector.broadcast %cst_28 : f32 to vector<32x256xf32>
    %109 = arith.select %107, %105, %108 : vector<32x256xi1>, vector<32x256xf32>
    %110 = vector.extract_strided_slice %87 {offsets = [0, 32], sizes = [32, 256], strides = [1, 1]} : vector<32x290xf32> to vector<32x256xf32>
    %cst_29 = arith.constant 0.000000e+00 : f32
    %111 = vector.shape_cast %24 : vector<1x256xi1> to vector<1x256xi1>
    %112 = vector.broadcast %111 : vector<1x256xi1> to vector<32x256xi1>
    %113 = vector.broadcast %cst_29 : f32 to vector<32x256xf32>
    %114 = arith.select %112, %110, %113 : vector<32x256xi1>, vector<32x256xf32>
    %115 = vector.extract_strided_slice %87 {offsets = [0, 33], sizes = [32, 256], strides = [1, 1]} : vector<32x290xf32> to vector<32x256xf32>
    %116 = vector.extract_strided_slice %87 {offsets = [0, 34], sizes = [32, 256], strides = [1, 1]} : vector<32x290xf32> to vector<32x256xf32>
    %cst_30 = arith.constant 0.000000e+00 : f32
    %117 = vector.shape_cast %26 : vector<1x256xi1> to vector<1x256xi1>
    %118 = vector.broadcast %117 : vector<1x256xi1> to vector<32x256xi1>
    %119 = vector.broadcast %cst_30 : f32 to vector<32x256xf32>
    %120 = arith.select %118, %116, %119 : vector<32x256xi1>, vector<32x256xf32>
    %121 = tpu.concatenate %92, %93, %98, %103, %104, %109, %114, %115, %120 in 0 : vector<32x256xf32>, vector<32x256xf32>, vector<32x256xf32>, vector<32x256xf32>, vector<32x256xf32>, vector<32x256xf32>, vector<32x256xf32>, vector<32x256xf32>, vector<32x256xf32> -> vector<288x256xf32>
    %cst_31 = arith.constant dense<0.000000e+00> : vector<1x256xf32>
    %122 = tpu.matmul %33, %121, %cst_31 {dimension_numbers = #tpu.dot_dimension_numbers<[1], [0], [0], [1], [0, 0, 1, 1], [], []>} : vector<1x288xf32>, vector<288x256xf32>, vector<1x256xf32> -> vector<1x256xf32>
    %123 = vector.broadcast %34 : vector<1x1xf32> to vector<1x256xf32>
    %124 = arith.addf %122, %123 : vector<1x256xf32>
    %125 = vector.extract_strided_slice %0 {offsets = [120, 0], sizes = [8, 1], strides = [1, 1]} : vector<240x1xf32> to vector<8x1xf32>
    %126 = vector.extract_strided_slice %0 {offsets = [128, 0], sizes = [8, 1], strides = [1, 1]} : vector<240x1xf32> to vector<8x1xf32>
    %c0_32 = arith.constant 0 : index
    %c0_33 = arith.constant 0 : index
    %127 = vector.load %arg7[%c0_32, %c0_33] : memref<32x72xf32, #tpu.memory_space<vmem>>, vector<32x72xf32>
    %128 = vector.extract_strided_slice %0 {offsets = [136, 0], sizes = [32, 1], strides = [1, 1]} : vector<240x1xf32> to vector<32x1xf32>
    %129 = vector.extract_strided_slice %0 {offsets = [168, 0], sizes = [32, 1], strides = [1, 1]} : vector<240x1xf32> to vector<32x1xf32>
    %130 = vector.extract_strided_slice %0 {offsets = [200, 0], sizes = [32, 1], strides = [1, 1]} : vector<240x1xf32> to vector<32x1xf32>
    %c0_34 = arith.constant 0 : index
    %c0_35 = arith.constant 0 : index
    %131 = vector.load %arg8[%c0_34, %c0_35] : memref<4x288xf32, #tpu.memory_space<vmem>>, vector<4x288xf32>
    %132 = vector.extract_strided_slice %0 {offsets = [232, 0], sizes = [4, 1], strides = [1, 1]} : vector<240x1xf32> to vector<4x1xf32>
    %133 = vector.broadcast %125 : vector<8x1xf32> to vector<8x256xf32>
    %134 = arith.mulf %5, %133 : vector<8x256xf32>
    %135 = vector.broadcast %126 : vector<8x1xf32> to vector<8x256xf32>
    %136 = arith.addf %134, %135 : vector<8x256xf32>
    %cst_36 = arith.constant 0.000000e+00 : f32
    %137 = vector.broadcast %cst_36 : f32 to vector<8x256xf32>
    %138 = arith.maximumf %136, %137 : vector<8x256xf32>
    %cst_37 = arith.constant 0.000000e+00 : f32
    %139 = vector.broadcast %cst_37 : f32 to vector<8x17xf32>
    %140 = tpu.concatenate %139, %138, %139 in 1 : vector<8x17xf32>, vector<8x256xf32>, vector<8x17xf32> -> vector<8x290xf32>
    %141 = vector.extract_strided_slice %140 {offsets = [0, 0], sizes = [8, 256], strides = [1, 1]} : vector<8x290xf32> to vector<8x256xf32>
    %cst_38 = arith.constant 0.000000e+00 : f32
    %142 = vector.shape_cast %24 : vector<1x256xi1> to vector<1x256xi1>
    %143 = vector.broadcast %142 : vector<1x256xi1> to vector<8x256xi1>
    %144 = vector.broadcast %cst_38 : f32 to vector<8x256xf32>
    %145 = arith.select %143, %141, %144 : vector<8x256xi1>, vector<8x256xf32>
    %146 = vector.extract_strided_slice %140 {offsets = [0, 1], sizes = [8, 256], strides = [1, 1]} : vector<8x290xf32> to vector<8x256xf32>
    %147 = vector.extract_strided_slice %140 {offsets = [0, 2], sizes = [8, 256], strides = [1, 1]} : vector<8x290xf32> to vector<8x256xf32>
    %cst_39 = arith.constant 0.000000e+00 : f32
    %148 = vector.shape_cast %26 : vector<1x256xi1> to vector<1x256xi1>
    %149 = vector.broadcast %148 : vector<1x256xi1> to vector<8x256xi1>
    %150 = vector.broadcast %cst_39 : f32 to vector<8x256xf32>
    %151 = arith.select %149, %147, %150 : vector<8x256xi1>, vector<8x256xf32>
    %152 = vector.extract_strided_slice %140 {offsets = [0, 16], sizes = [8, 256], strides = [1, 1]} : vector<8x290xf32> to vector<8x256xf32>
    %cst_40 = arith.constant 0.000000e+00 : f32
    %153 = vector.shape_cast %24 : vector<1x256xi1> to vector<1x256xi1>
    %154 = vector.broadcast %153 : vector<1x256xi1> to vector<8x256xi1>
    %155 = vector.broadcast %cst_40 : f32 to vector<8x256xf32>
    %156 = arith.select %154, %152, %155 : vector<8x256xi1>, vector<8x256xf32>
    %157 = vector.extract_strided_slice %140 {offsets = [0, 17], sizes = [8, 256], strides = [1, 1]} : vector<8x290xf32> to vector<8x256xf32>
    %158 = vector.extract_strided_slice %140 {offsets = [0, 18], sizes = [8, 256], strides = [1, 1]} : vector<8x290xf32> to vector<8x256xf32>
    %cst_41 = arith.constant 0.000000e+00 : f32
    %159 = vector.shape_cast %26 : vector<1x256xi1> to vector<1x256xi1>
    %160 = vector.broadcast %159 : vector<1x256xi1> to vector<8x256xi1>
    %161 = vector.broadcast %cst_41 : f32 to vector<8x256xf32>
    %162 = arith.select %160, %158, %161 : vector<8x256xi1>, vector<8x256xf32>
    %163 = vector.extract_strided_slice %140 {offsets = [0, 32], sizes = [8, 256], strides = [1, 1]} : vector<8x290xf32> to vector<8x256xf32>
    %cst_42 = arith.constant 0.000000e+00 : f32
    %164 = vector.shape_cast %24 : vector<1x256xi1> to vector<1x256xi1>
    %165 = vector.broadcast %164 : vector<1x256xi1> to vector<8x256xi1>
    %166 = vector.broadcast %cst_42 : f32 to vector<8x256xf32>
    %167 = arith.select %165, %163, %166 : vector<8x256xi1>, vector<8x256xf32>
    %168 = vector.extract_strided_slice %140 {offsets = [0, 33], sizes = [8, 256], strides = [1, 1]} : vector<8x290xf32> to vector<8x256xf32>
    %169 = vector.extract_strided_slice %140 {offsets = [0, 34], sizes = [8, 256], strides = [1, 1]} : vector<8x290xf32> to vector<8x256xf32>
    %cst_43 = arith.constant 0.000000e+00 : f32
    %170 = vector.shape_cast %26 : vector<1x256xi1> to vector<1x256xi1>
    %171 = vector.broadcast %170 : vector<1x256xi1> to vector<8x256xi1>
    %172 = vector.broadcast %cst_43 : f32 to vector<8x256xf32>
    %173 = arith.select %171, %169, %172 : vector<8x256xi1>, vector<8x256xf32>
    %174 = tpu.concatenate %145, %146, %151, %156, %157, %162, %167, %168, %173 in 0 : vector<8x256xf32>, vector<8x256xf32>, vector<8x256xf32>, vector<8x256xf32>, vector<8x256xf32>, vector<8x256xf32>, vector<8x256xf32>, vector<8x256xf32>, vector<8x256xf32> -> vector<72x256xf32>
    %cst_44 = arith.constant dense<0.000000e+00> : vector<32x256xf32>
    %175 = tpu.matmul %127, %174, %cst_44 {dimension_numbers = #tpu.dot_dimension_numbers<[1], [0], [0], [1], [0, 0, 1, 1], [], []>} : vector<32x72xf32>, vector<72x256xf32>, vector<32x256xf32> -> vector<32x256xf32>
    %176 = vector.broadcast %128 : vector<32x1xf32> to vector<32x256xf32>
    %177 = arith.addf %175, %176 : vector<32x256xf32>
    %178 = vector.broadcast %129 : vector<32x1xf32> to vector<32x256xf32>
    %179 = arith.mulf %177, %178 : vector<32x256xf32>
    %180 = vector.broadcast %130 : vector<32x1xf32> to vector<32x256xf32>
    %181 = arith.addf %179, %180 : vector<32x256xf32>
    %cst_45 = arith.constant 0.000000e+00 : f32
    %182 = vector.broadcast %cst_45 : f32 to vector<32x256xf32>
    %183 = arith.maximumf %181, %182 : vector<32x256xf32>
    %cst_46 = arith.constant 0.000000e+00 : f32
    %184 = vector.broadcast %cst_46 : f32 to vector<32x17xf32>
    %185 = tpu.concatenate %184, %183, %184 in 1 : vector<32x17xf32>, vector<32x256xf32>, vector<32x17xf32> -> vector<32x290xf32>
    %186 = vector.extract_strided_slice %185 {offsets = [0, 0], sizes = [32, 256], strides = [1, 1]} : vector<32x290xf32> to vector<32x256xf32>
    %cst_47 = arith.constant 0.000000e+00 : f32
    %187 = vector.shape_cast %24 : vector<1x256xi1> to vector<1x256xi1>
    %188 = vector.broadcast %187 : vector<1x256xi1> to vector<32x256xi1>
    %189 = vector.broadcast %cst_47 : f32 to vector<32x256xf32>
    %190 = arith.select %188, %186, %189 : vector<32x256xi1>, vector<32x256xf32>
    %191 = vector.extract_strided_slice %185 {offsets = [0, 1], sizes = [32, 256], strides = [1, 1]} : vector<32x290xf32> to vector<32x256xf32>
    %192 = vector.extract_strided_slice %185 {offsets = [0, 2], sizes = [32, 256], strides = [1, 1]} : vector<32x290xf32> to vector<32x256xf32>
    %cst_48 = arith.constant 0.000000e+00 : f32
    %193 = vector.shape_cast %26 : vector<1x256xi1> to vector<1x256xi1>
    %194 = vector.broadcast %193 : vector<1x256xi1> to vector<32x256xi1>
    %195 = vector.broadcast %cst_48 : f32 to vector<32x256xf32>
    %196 = arith.select %194, %192, %195 : vector<32x256xi1>, vector<32x256xf32>
    %197 = vector.extract_strided_slice %185 {offsets = [0, 16], sizes = [32, 256], strides = [1, 1]} : vector<32x290xf32> to vector<32x256xf32>
    %cst_49 = arith.constant 0.000000e+00 : f32
    %198 = vector.shape_cast %24 : vector<1x256xi1> to vector<1x256xi1>
    %199 = vector.broadcast %198 : vector<1x256xi1> to vector<32x256xi1>
    %200 = vector.broadcast %cst_49 : f32 to vector<32x256xf32>
    %201 = arith.select %199, %197, %200 : vector<32x256xi1>, vector<32x256xf32>
    %202 = vector.extract_strided_slice %185 {offsets = [0, 17], sizes = [32, 256], strides = [1, 1]} : vector<32x290xf32> to vector<32x256xf32>
    %203 = vector.extract_strided_slice %185 {offsets = [0, 18], sizes = [32, 256], strides = [1, 1]} : vector<32x290xf32> to vector<32x256xf32>
    %cst_50 = arith.constant 0.000000e+00 : f32
    %204 = vector.shape_cast %26 : vector<1x256xi1> to vector<1x256xi1>
    %205 = vector.broadcast %204 : vector<1x256xi1> to vector<32x256xi1>
    %206 = vector.broadcast %cst_50 : f32 to vector<32x256xf32>
    %207 = arith.select %205, %203, %206 : vector<32x256xi1>, vector<32x256xf32>
    %208 = vector.extract_strided_slice %185 {offsets = [0, 32], sizes = [32, 256], strides = [1, 1]} : vector<32x290xf32> to vector<32x256xf32>
    %cst_51 = arith.constant 0.000000e+00 : f32
    %209 = vector.shape_cast %24 : vector<1x256xi1> to vector<1x256xi1>
    %210 = vector.broadcast %209 : vector<1x256xi1> to vector<32x256xi1>
    %211 = vector.broadcast %cst_51 : f32 to vector<32x256xf32>
    %212 = arith.select %210, %208, %211 : vector<32x256xi1>, vector<32x256xf32>
    %213 = vector.extract_strided_slice %185 {offsets = [0, 33], sizes = [32, 256], strides = [1, 1]} : vector<32x290xf32> to vector<32x256xf32>
    %214 = vector.extract_strided_slice %185 {offsets = [0, 34], sizes = [32, 256], strides = [1, 1]} : vector<32x290xf32> to vector<32x256xf32>
    %cst_52 = arith.constant 0.000000e+00 : f32
    %215 = vector.shape_cast %26 : vector<1x256xi1> to vector<1x256xi1>
    %216 = vector.broadcast %215 : vector<1x256xi1> to vector<32x256xi1>
    %217 = vector.broadcast %cst_52 : f32 to vector<32x256xf32>
    %218 = arith.select %216, %214, %217 : vector<32x256xi1>, vector<32x256xf32>
    %219 = tpu.concatenate %190, %191, %196, %201, %202, %207, %212, %213, %218 in 0 : vector<32x256xf32>, vector<32x256xf32>, vector<32x256xf32>, vector<32x256xf32>, vector<32x256xf32>, vector<32x256xf32>, vector<32x256xf32>, vector<32x256xf32>, vector<32x256xf32> -> vector<288x256xf32>
    %cst_53 = arith.constant dense<0.000000e+00> : vector<4x256xf32>
    %220 = tpu.matmul %131, %219, %cst_53 {dimension_numbers = #tpu.dot_dimension_numbers<[1], [0], [0], [1], [0, 0, 1, 1], [], []>} : vector<4x288xf32>, vector<288x256xf32>, vector<4x256xf32> -> vector<4x256xf32>
    %221 = vector.broadcast %132 : vector<4x1xf32> to vector<4x256xf32>
    %222 = arith.addf %220, %221 : vector<4x256xf32>
    %223 = arith.negf %124 : vector<1x256xf32>
    %224 = math.exp %223 : vector<1x256xf32>
    %cst_54 = arith.constant 1.000000e+00 : f32
    %225 = vector.broadcast %cst_54 : f32 to vector<1x256xf32>
    %226 = arith.addf %225, %224 : vector<1x256xf32>
    %227 = arith.divf %225, %226 : vector<1x256xf32>
    %c0_55 = arith.constant 0 : index
    %228 = memref.load %arg1[%c0_55] : memref<2xf32, #tpu.memory_space<smem>>
    %c1 = arith.constant 1 : index
    %229 = memref.load %arg1[%c1] : memref<2xf32, #tpu.memory_space<smem>>
    %230 = vector.broadcast %227 : vector<1x256xf32> to vector<4x256xf32>
    %231 = arith.mulf %230, %2 : vector<4x256xf32>
    %232 = vector.broadcast %228 : f32 to vector<4x256xf32>
    %233 = arith.mulf %232, %231 : vector<4x256xf32>
    %234 = vector.broadcast %229 : f32 to vector<4x256xf32>
    %235 = arith.mulf %234, %222 : vector<4x256xf32>
    %236 = arith.addf %233, %235 : vector<4x256xf32>
    %c0_56 = arith.constant 0 : index
    %c0_57 = arith.constant 0 : index
    %c0_58 = arith.constant 0 : index
    %237 = vector.load %arg9[%c0_56, %c0_57, %c0_58] : memref<1x4x256xf32, #tpu.memory_space<vmem>>, vector<1x4x256xf32>
    %238 = vector.shape_cast %237 : vector<1x4x256xf32> to vector<4x256xf32>
    %239 = vector.shape_cast %236 : vector<4x256xf32> to vector<1x4x256xf32>
    tpu.vector_store %arg9[%c0_56, %c0_57, %c0_58], %239 {strides = array<i32>} : memref<1x4x256xf32, #tpu.memory_space<vmem>>, vector<1x4x256xf32>,
    %c0_59 = arith.constant 0 : index
    %c0_60 = arith.constant 0 : index
    %c0_61 = arith.constant 0 : index
    %240 = vector.load %arg10[%c0_59, %c0_60, %c0_61] : memref<1x1x256xf32, #tpu.memory_space<vmem>>, vector<1x1x256xf32>
    %241 = vector.shape_cast %240 : vector<1x1x256xf32> to vector<1x256xf32>
    %242 = vector.shape_cast %227 : vector<1x256xf32> to vector<1x1x256xf32>
    tpu.vector_store %arg10[%c0_59, %c0_60, %c0_61], %242 {strides = array<i32>} : memref<1x1x256xf32, #tpu.memory_space<vmem>>, vector<1x1x256xf32>,
    return
  }
  func.func @transform_0(%arg0: i32) -> i32 {
    %c0_i32 = arith.constant 0 : i32
    %c0_i32_0 = arith.constant 0 : i32
    return %c0_i32 : i32
  }
  func.func @transform_1(%arg0: i32) -> (i32, i32, i32) {
    %c0_i32 = arith.constant 0 : i32
    %c0_i32_0 = arith.constant 0 : i32
    %c0_i32_1 = arith.constant 0 : i32
    return %arg0, %c0_i32, %c0_i32_0 : i32, i32, i32
  }
  func.func @transform_2(%arg0: i32) -> (i32, i32, i32) {
    %c0_i32 = arith.constant 0 : i32
    %c0_i32_0 = arith.constant 0 : i32
    %c0_i32_1 = arith.constant 0 : i32
    return %arg0, %c0_i32, %c0_i32_0 : i32, i32, i32
  }
  func.func @transform_3(%arg0: i32) -> (i32, i32) {
    %c0_i32 = arith.constant 0 : i32
    %c0_i32_0 = arith.constant 0 : i32
    %c0_i32_1 = arith.constant 0 : i32
    return %c0_i32, %c0_i32_0 : i32, i32
  }
  func.func @transform_4(%arg0: i32) -> (i32, i32) {
    %c0_i32 = arith.constant 0 : i32
    %c0_i32_0 = arith.constant 0 : i32
    %c0_i32_1 = arith.constant 0 : i32
    return %c0_i32, %c0_i32_0 : i32, i32
  }
  func.func @transform_5(%arg0: i32) -> (i32, i32) {
    %c0_i32 = arith.constant 0 : i32
    %c0_i32_0 = arith.constant 0 : i32
    %c0_i32_1 = arith.constant 0 : i32
    return %c0_i32, %c0_i32_0 : i32, i32
  }
  func.func @transform_6(%arg0: i32) -> (i32, i32) {
    %c0_i32 = arith.constant 0 : i32
    %c0_i32_0 = arith.constant 0 : i32
    %c0_i32_1 = arith.constant 0 : i32
    return %c0_i32, %c0_i32_0 : i32, i32
  }
  func.func @transform_7(%arg0: i32) -> (i32, i32) {
    %c0_i32 = arith.constant 0 : i32
    %c0_i32_0 = arith.constant 0 : i32
    %c0_i32_1 = arith.constant 0 : i32
    return %c0_i32, %c0_i32_0 : i32, i32
  }
  func.func @transform_8(%arg0: i32) -> (i32, i32, i32) {
    %c0_i32 = arith.constant 0 : i32
    %c0_i32_0 = arith.constant 0 : i32
    %c0_i32_1 = arith.constant 0 : i32
    return %arg0, %c0_i32, %c0_i32_0 : i32, i32, i32
  }
  func.func @transform_9(%arg0: i32) -> (i32, i32, i32) {
    %c0_i32 = arith.constant 0 : i32
    %c0_i32_0 = arith.constant 0 : i32
    %c0_i32_1 = arith.constant 0 : i32
    return %arg0, %c0_i32, %c0_i32_0 : i32, i32, i32
  }
}

</mosaic_0001>

<bundles_post_ra>
// kernel: tirg_forward.1
= control target key start
LH: loop header
LB: loop body
LE: loop exit
PB: predicated region body
PF: predicated region fallthrough
CT: control target
= control target key end

     0   :  { %15 = vsyncpa [#allocation3], 0  ;;  %s2716_s30 = smov 0   ;;  %s4481_s0 = inlined_call_operand.vmem [shape: f32[2], index: 0, kind: input, shape index: {}]   ;;  %s4482_s1 = inlined_call_operand.vmem [shape: f32[2,4,256], index: 1, kind: input, shape index: {}]   ;;  %s4483_s2 = inlined_call_operand.vmem [shape: f32[2,4,256], index: 2, kind: input, shape index: {}]   ;;  %s4484_s3 = inlined_call_operand.vmem [shape: f32[240,1], index: 3, kind: input, shape index: {}]   ;;  %s4485_s4 = inlined_call_operand.vmem [shape: f32[32,72], index: 4, kind: input, shape index: {}]   ;;  %s4486_s5 = inlined_call_operand.vmem [shape: f32[1,288], index: 5, kind: input, shape index: {}]   ;;  %s4487_s6 = inlined_call_operand.vmem [shape: f32[32,72], index: 6, kind: input, shape index: {}]   ;;  %s4488_s7 = inlined_call_operand.vmem [shape: f32[4,288], index: 7, kind: input, shape index: {}]   ;;  %s4489_s8 = inlined_call_operand.vmem [shape: f32[2,4,256], index: 8, kind: output, shape index: {0}]   ;;  %s4490_s9 = inlined_call_operand.vmem [shape: f32[2,1,256], index: 9, kind: output, shape index: {1}]  }
   0x1 LB: > { %s2722_s10 = sadd.s32 4294967295, %s2651_s30   ;;  %p2431_p0 = scmp.ge.s32.totalorder %s2651_s30, 1  ;;  %s2651_s30 = sphi %s2716_s30, %s21_s30  }
   0x2   : > { %p256_p1 = scmp.lt.s32.totalorder %s2651_s30, 3  ;;  %s269_s13 = sshll.u32 %s4481_s0, 4  ;;  %s270_s13 = int_to_ptr.vmem [resolvable:$true] %s269_s13 }
   0x3   : > { %p2589_p3 = scmp.eq.s32.totalorder %s2722_s10, 0  ;;  %s2626_s15 = scalar_lea.vmem %s270_s13, 16 }
   0x4   : > { %p2729_p2 = pnand %p2431_p0, %p256_p1  ;;  %p2627_p6 = scmp.ne.s32.totalorder %s270_s13, %s2626_s15 }
   0x5   : > { %p2634_p10 = scmp.lt.s32.totalorder %s270_s13, %s270_s13  ;;  %p2635_p11 = scmp.lt.s32.totalorder %s2626_s15, %s2626_s15 }
   0x6   : > { %p2585_p4 = pneg %p2729_p2 }
   0x7   : > { %p2636_p12 = por %p2635_p11, %p2634_p10 }
   0x8   : > { %p2586_p5 = pnand %p2589_p3, %p2585_p4 }
   0xa   : > { %p2628_p7 = pneg %p2586_p5 }
   0xc   : > { %p2629_p8 = pnand %p2628_p7, %p2627_p6 }
   0xe   : > { %p2630_p9 = pneg %p2629_p8 }
  0x10   : > { %p2637_p13 = pnand %p2636_p12, %p2630_p9 }
  0x12   : > { %2640 = shalt.err (!%p2637_p13)
}
  0x13   : > { %s2653_s16 = smov [#allocation2]   ;;  %313 = sbr.rel (%p2729_p2) target bundleno = 1822 (0x71e), region = 52 }
  0x14   : > { %2588 = dma.vmem_to_smem (!%p2586_p5), %s270_s13, 16, %s2653_s16, [#allocation3]  }
  0x18   : > { %2646 = dma.done.wait (%p2589_p3), [#allocation3], 16  }
  0x19   : > { %2648 = vsyncadd (%p2589_p3), [#allocation3], 4294967280 }
  0x1a   : > { %319 = sfence }
  0x1b   : > { %v378_v0 = vld [vmem:[%s4484_s3] sm:$0xff]  ;;  %v2654_v1 = vmov 0   ;;  %v379_v2 = vld [vmem:[%s4484_s3 + $0x8] sm:$0xff]  ;;  %p359_p0 = scmp.lt.s32.totalorder %s2722_s10, 1  ;;  %vm416_vm0 = vcmask 1043456   ;;  %s4497_s28 = smov 17   ;;  %v4499_v37 = vlaneseq  ;;  %v4681_v41 = vlaneseq }
  0x1c   : > { %2612 = vset.pattern.permute.xlu0 %v2654_v1  ;;  %2613 = vset.pattern.permute.xlu1 %v2654_v1  ;;  %vm477_vm1 = vcmask 138240   ;;  %s4495_s29 = smov 94   ;;  %s2657_s11 = smov 95   ;;  %v4500_v22 = vmov 0.0   ;;  %v383_v23 = vld [vmem:[%s4484_s3 + $0x28] sm:$0xff]  ;;  %v382_v24 = vld [vmem:[%s4484_s3 + $0x20] sm:$0xff] }
  0x1d   : > { %457 = vperm.xlu0 %2612, %v378_v0   ;;  %s4685_s10 = smov (!%p359_p0, %s2722_s10), 1  ;;  %s2658_s12 = smov 96   ;;  %691 = vmatprep.mubr.f32.mxu1 %v4500_v22  ;;  %v387_v25 = vld [vmem:[%s4484_s3 + $0x48] sm:$0xff]  ;;  %v381_v26 = vld [vmem:[%s4484_s3 + $0x18] sm:$0xff]  ;;  %v386_v27 = vld [vmem:[%s4484_s3 + $0x40] sm:$0xff]  ;;  %v420_v38 = vand.u32 127, %v4499_v37 }
  0x1e   : > { %s2755_s21 = sshll.u32 %s4685_s10, 3  ;;  %s2659_s13 = smov 110   ;;  %1362 = vmatprep.mubr.f32.mxu0 %v4500_v22  ;;  %v391_v28 = vld [vmem:[%s4484_s3 + $0x68] sm:$0xff]  ;;  %v380_v29 = vld [vmem:[%s4484_s3 + $0x10] sm:$0xff]  ;;  %v385_v30 = vld [vmem:[%s4484_s3 + $0x38] sm:$0xff]  ;;  %vm554_vm2 = vcmask 769024  }
  0x1f   : > { %s368_s24 = scalar_lea.vmem %s4483_s2, %s2755_s21  ;;  %s2765_s27 = scalar_lea.vmem %s4482_s1, %s2755_s21  ;;  %v390_v31 = vld [vmem:[%s4484_s3 + $0x60] sm:$0xff]  ;;  %v384_v32 = vld [vmem:[%s4484_s3 + $0x30] sm:$0xff]  ;;  %v389_v33 = vld [vmem:[%s4484_s3 + $0x58] sm:$0xff]  ;;  %v421_v39 = vadd.s32 128, %v420_v38  ;;  %v426_v42 = vand.u32 15, %v420_v38  ;;  %vm589_vm5 = vcmask 777216  }
  0x20   : > { %v409_v3 = vld [vmem:[%s368_s24] sm:$0xff]  ;;  %s2660_s14 = smov 111   ;;  %s2661_s15 = smov 112   ;;  %v388_v34 = vld [vmem:[%s4484_s3 + $0x50] sm:$0xff]  ;;  %v393_v35 = vld [vmem:[%s4484_s3 + $0x78] sm:$0xff]  ;;  %vm541_vm6 = vcmask 785408  }
  0x21   : > { %464 = vperm.xlu0 %2612, %v379_v2   ;;  %v408_v4 = vld [vmem:[%s2765_s27] sm:$0xff]  ;;  %v414_v5 = vcombine.low %v409_v3, %v409_v3  ;;  %s4493_s16 = smov 126   ;;  %s4491_s17 = smov 127   ;;  %v433_v40 = vand.u32 15, %v421_v39  ;;  %vm2878_vm4 = vcmp.ne.s32.totalorder %v426_v42, 15  ;;  %vm2894_vm8 = vcmp.ne.s32.totalorder %v426_v42, 0 }
  0x22   : > { %v2768_v6 = vcombine.high %v408_v4, %v408_v4  ;;  %v394_v36 = vld [vmem:[%s4484_s3 + $0x80] sm:$0xff]  ;;  %vm528_vm9 = vcmask 900096   ;;  %vm578_vm10 = vcmask 908288   ;;  %vm515_vm11 = vcmask 916480   ;;  %s4541_s25 = smov 126   ;;  %s4542_s26 = smov 127  }
  0x23   : > { %v2770_v8 = vsel %vm416_vm0, %v408_v4, %v414_v5  ;;  %vm2871_vm3 = vcmp.ne.s32.totalorder %v433_v40, 15  ;;  %vm2887_vm7 = vcmp.ne.s32.totalorder %v433_v40, 0  ;;  %vm502_vm12 = vcmask 1031168   ;;  %s4587_s20 = smov 17   ;;  %s4635_s22 = smov 94  }
  0x24   : > { %4529 = vst [vmem:[#allocation5_spill] sm:$0xff] %v2768_v6  ;;  %v2773_v9 = vsel %vm416_vm0, %v2768_v6, %v409_v3  ;;  %vm567_vm13 = vcmask 1039360   ;;  %vm614_vm14 = vcmask 588800   ;;  %vm1224_vm15 = vcmask 261120   ;;  %s2442_s24 = sshll.u32 %s4685_s10, 1  ;;  %s2271_s18 = sld [smem:[#allocation2]] }
  0x25   : > { %vm2316_vm0 = vcmp.lt.s32.totalorder %v4681_v41, 256 }
  0x98   : > { %v458_v7 = vpop.permute.xlu0 %457 }
  0x99   : > { %v460_v10 = vmul.f32 %v458_v7, %v2770_v8  ;;  %v461_v12 = vmul.f32 %v458_v7, %v2773_v9 }
  0x9c   : > { %v465_v11 = vpop.permute.xlu0 %464 }
  0x9d   : > { %v467_v13 = vadd.f32 %v465_v11, %v460_v10  ;;  %v468_v14 = vadd.f32 %v465_v11, %v461_v12 }
  0x9f   : > { %v469_v15 = vmax.f32 %v467_v13, 0.0  ;;  %v470_v16 = vmax.f32 %v468_v14, 0.0 }
  0xa1   : > { %473 = vrot.lane.b32.xlu1 %v469_v15, %s4497_s28 }
  0xa5   : > { %475 = vrot.lane.b32.xlu1 %v470_v16, %s4497_s28 }
 0x113   : > { %v474_v17 = vpop.permute.xlu1 %473 }
 0x114   : > { %v2787_v21 = vsel %vm477_vm1, 0.0, %v474_v17 }
 0x117   : > { %v476_v18 = vpop.permute.xlu1 %475 }
 0x118   : > { %v2780_v19 = vsel %vm477_vm1, %v474_v17, %v476_v18  ;;  %v483_v20 = vsel %vm477_vm1, %v476_v18, 0.0 }
 0x119   : > { %552 = vrot.lane.b32.xlu1 %v483_v20, %s4495_s29  ;;  %550 = vrot.lane.b32.xlu0 %v2780_v19, %s4495_s29 }
 0x11d   : > { %585 = vrot.lane.b32.xlu1 %v2780_v19, %s2657_s11  ;;  %548 = vrot.lane.b32.xlu0 %v2787_v21, %s4495_s29 }
 0x121   : > { %583 = vrot.lane.b32.xlu1 %v2787_v21, %s2657_s11  ;;  %587 = vrot.lane.b32.xlu0 %v483_v20, %s2657_s11 }
 0x125   : > { %539 = vrot.lane.b32.xlu1 %v483_v20, %s2658_s12  ;;  %537 = vrot.lane.b32.xlu0 %v2780_v19, %s2658_s12 }
 0x129   : > { %524 = vrot.lane.b32.xlu1 %v2780_v19, %s2659_s13  ;;  %535 = vrot.lane.b32.xlu0 %v2787_v21, %s2658_s12 }
 0x12d   : > { %522 = vrot.lane.b32.xlu1 %v2787_v21, %s2659_s13  ;;  %526 = vrot.lane.b32.xlu0 %v483_v20, %s2659_s13 }
 0x131   : > { %576 = vrot.lane.b32.xlu1 %v483_v20, %s2660_s14  ;;  %574 = vrot.lane.b32.xlu0 %v2780_v19, %s2660_s14 }
 0x135   : > { %511 = vrot.lane.b32.xlu1 %v2780_v19, %s2661_s15  ;;  %572 = vrot.lane.b32.xlu0 %v2787_v21, %s2660_s14 }
 0x139   : > { %509 = vrot.lane.b32.xlu1 %v2787_v21, %s2661_s15  ;;  %513 = vrot.lane.b32.xlu0 %v483_v20, %s2661_s15 }
 0x13d   : > { %500 = vrot.lane.b32.xlu1 %v483_v20, %s4493_s16  ;;  %498 = vrot.lane.b32.xlu0 %v2780_v19, %s4493_s16 }
 0x141   : > { %563 = vrot.lane.b32.xlu1 %v2780_v19, %s4491_s17  ;;  %496 = vrot.lane.b32.xlu0 %v2787_v21, %s4493_s16  ;;  %s377_s16 = scalar_lea.vmem %s4490_s9, %s2442_s24 }
 0x145   : > { %561 = vrot.lane.b32.xlu1 %v2787_v21, %s4491_s17  ;;  %565 = vrot.lane.b32.xlu0 %v483_v20, %s4491_s17  ;;  %s2575_s17 = sld [smem:[#allocation2 + $0x1]] }
 0x149   : > { %611 = vperm.xlu0 %2612, %v383_v23   ;;  %606 = vperm.xlu1 %2613, %v382_v24  }
 0x14d   : > { %733 = vperm.xlu0 %2612, %v387_v25   ;;  %601 = vperm.xlu1 %2613, %v381_v26  }
 0x151   : > { %728 = vperm.xlu0 %2612, %v386_v27   ;;  %761 = vperm.xlu1 %2613, %v391_v28   ;;  %v450_v28 = vld [vmem:[%s4485_s4] sm:$0xff] }
 0x155   : > { %596 = vperm.xlu0 %2612, %v380_v29   ;;  %723 = vperm.xlu1 %2613, %v385_v30   ;;  %v451_v29 = vld [vmem:[%s4485_s4 + $0x8] sm:$0xff] }
 0x159   : > { %756 = vperm.xlu0 %2612, %v390_v31   ;;  %718 = vperm.xlu1 %2613, %v384_v32  }
 0x15d   : > { %751 = vperm.xlu0 %2612, %v389_v33   ;;  %746 = vperm.xlu1 %2613, %v388_v34  }
 0x161   : > { %1377 = vperm.xlu0 %2612, %v393_v35   ;;  %1384 = vperm.xlu1 %2613, %v394_v36  }
 0x18b   : > { %v553_v43 = vpop.permute.xlu1 %552  ;;  %v551_v44 = vpop.permute.xlu0 %550 }
 0x18c   : > { %v556_v45 = vsel %vm554_vm2, %v551_v44, %v553_v43 }
 0x18d   : > { %2443 = vmatprep.subr.msk.mxu1 %vm2871_vm3, %v556_v45 }
 0x18f   : > { %v586_v47 = vpop.permute.xlu1 %585  ;;  %v549_v48 = vpop.permute.xlu0 %548 }
 0x190   : > { %v555_v49 = vsel %vm554_vm2, %v549_v48, %v551_v44 }
 0x191   : > { %2444 = vmatpush1.msk.msra.mxu1 %vm2878_vm4, %v555_v49 }
 0x193   : > { %v584_v50 = vpop.permute.xlu1 %583  ;;  %v588_v51 = vpop.permute.xlu0 %587 }
 0x194   : > { %v591_v52 = vsel %vm589_vm5, %v586_v47, %v588_v51  ;;  %v590_v53 = vsel %vm589_vm5, %v584_v50, %v586_v47 }
 0x195   : > { %643 = vmatprep.subr.mxu1 %v591_v52 }
 0x196   : > { %644 = vmatpush1.msra.mxu1 %v590_v53 }
 0x197   : > { %v540_v55 = vpop.permute.xlu1 %539  ;;  %v538_v56 = vpop.permute.xlu0 %537 }
 0x198   : > { %v543_v57 = vsel %vm541_vm6, %v538_v56, %v540_v55 }
 0x199   : > { %2445 = vmatprep.subr.msk.mxu1 %vm2887_vm7, %v543_v57 }
 0x19b   : > { %v525_v59 = vpop.permute.xlu1 %524  ;;  %v536_v60 = vpop.permute.xlu0 %535 }
 0x19c   : > { %v542_v61 = vsel %vm541_vm6, %v536_v60, %v538_v56 }
 0x19d   : > { %2446 = vmatpush1.msk.msra.mxu1 %vm2894_vm8, %v542_v61 }
 0x19f   : > { %v523_v62 = vpop.permute.xlu1 %522  ;;  %v527_v63 = vpop.permute.xlu0 %526 }
 0x1a0   : > { %v529_v0 = vsel %vm528_vm9, %v523_v62, %v525_v59  ;;  %v530_v1 = vsel %vm528_vm9, %v525_v59, %v527_v63 }
 0x1a1   : > { %2447 = vmatprep.subr.msk.mxu1 %vm2871_vm3, %v530_v1 }
 0x1a2   : > { %2448 = vmatpush1.msk.msra.mxu1 %vm2878_vm4, %v529_v0 }
 0x1a3   : > { %v577_v2 = vpop.permute.xlu1 %576  ;;  %v575_v3 = vpop.permute.xlu0 %574 }
 0x1a4   : > { %v580_v4 = vsel %vm578_vm10, %v575_v3, %v577_v2 }
 0x1a5   : > { %649 = vmatprep.subr.mxu1 %v580_v4 }
 0x1a7   : > { %v512_v5 = vpop.permute.xlu1 %511  ;;  %v573_v7 = vpop.permute.xlu0 %572 }
 0x1a8   : > { %v579_v10 = vsel %vm578_vm10, %v573_v7, %v575_v3 }
 0x1a9   : > { %650 = vmatpush1.msra.mxu1 %v579_v10 }
 0x1ab   : > { %v510_v11 = vpop.permute.xlu1 %509  ;;  %v514_v12 = vpop.permute.xlu0 %513 }
 0x1ac   : > { %v516_v13 = vsel %vm515_vm11, %v510_v11, %v512_v5  ;;  %v517_v14 = vsel %vm515_vm11, %v512_v5, %v514_v12 }
 0x1ad   : > { %2449 = vmatprep.subr.msk.mxu1 %vm2887_vm7, %v517_v14 }
 0x1ae   : > { %2450 = vmatpush1.msk.msra.mxu1 %vm2894_vm8, %v516_v13 }
 0x1af   : > { %v501_v15 = vpop.permute.xlu1 %500  ;;  %v499_v16 = vpop.permute.xlu0 %498 }
 0x1b0   : > { %v504_v17 = vsel %vm502_vm12, %v499_v16, %v501_v15 }
 0x1b1   : > { %2451 = vmatprep.subr.msk.mxu1 %vm2871_vm3, %v504_v17 }
 0x1b3   : > { %v564_v18 = vpop.permute.xlu1 %563  ;;  %v497_v20 = vpop.permute.xlu0 %496 }
 0x1b4   : > { %v503_v23 = vsel %vm502_vm12, %v497_v20, %v499_v16 }
 0x1b5   : > { %2452 = vmatpush1.msk.msra.mxu1 %vm2878_vm4, %v503_v23 }
 0x1b7   : > { %v562_v24 = vpop.permute.xlu1 %561  ;;  %v566_v25 = vpop.permute.xlu0 %565 }
 0x1b8   : > { %v569_v26 = vsel %vm567_vm13, %v564_v18, %v566_v25  ;;  %v568_v27 = vsel %vm567_vm13, %v562_v24, %v564_v18 }
 0x1b9   : > { %655 = vmatprep.subr.mxu1 %v569_v26 }
 0x1ba   : > { %656 = vmatpush1.msra.mxu1 %v568_v27 }
 0x1bb   : > { %2453 = vmatprep.subr.msk.mxu1 %vm2887_vm7, %v2780_v19  ;;  %v452_v19 = vld [vmem:[%s4485_s4 + $0x10] sm:$0xff] }
 0x1bc   : > { %2454 = vmatpush1.msk.msra.mxu1 %vm2894_vm8, %v2787_v21  ;;  %v453_v21 = vld [vmem:[%s4485_s4 + $0x18] sm:$0xff] }
 0x1bd   : > { %2455 = vmatmul.mubr.msk.f32.vlgmr.msra.gmra.mxu1 %vm614_vm14, %v450_v28 }
 0x1be   : > { %697 = vmatprep.mubr.f32.mxu1 %v4500_v22 }
 0x1c1   : > { %2456 = vmatmul.mubr.msk.f32.gmra.mxu1 %vm614_vm14, %v451_v29 }
 0x1c2   : > { %703 = vmatprep.mubr.f32.mxu1 %v4500_v22 }
 0x1c4   : > { %v612_v30 = vpop.permute.xlu0 %611  ;;  %v607_v31 = vpop.permute.xlu1 %606 }
 0x1c5   : > { %2457 = vmatmul.mubr.msk.f32.gmra.mxu1 %vm614_vm14, %v452_v19 }
 0x1c6   : > { %709 = vmatprep.mubr.f32.mxu1 %v4500_v22 }
 0x1c8   : > { %v734_v32 = vpop.permute.xlu0 %733  ;;  %v602_v33 = vpop.permute.xlu1 %601 }
 0x1c9   : > { %2458 = vmatmul.mubr.msk.f32.gmra.mxu1 %vm614_vm14, %v453_v21 }
 0x1cc   : > { %v729_v34 = vpop.permute.xlu0 %728  ;;  %v762_v35 = vpop.permute.xlu1 %761 }
 0x1d0   : > { %v597_v36 = vpop.permute.xlu0 %596  ;;  %v724_v39 = vpop.permute.xlu1 %723 }
 0x1d4   : > { %v757_v40 = vpop.permute.xlu0 %756  ;;  %v719_v47 = vpop.permute.xlu1 %718 }
 0x1d8   : > { %v752_v50 = vpop.permute.xlu0 %751  ;;  %v747_v5 = vpop.permute.xlu1 %746 }
 0x1dc   : > { %v1378_v15 = vpop.permute.xlu0 %1377  ;;  %v1385_v27 = vpop.permute.xlu1 %1384 }
 0x1dd   : > { %v1380_v23 = vmul.f32 %v1378_v15, %v2770_v8  ;;  %v1381_v28 = vmul.f32 %v1378_v15, %v2773_v9 }
 0x1df   : > { %v1387_v21 = vadd.f32 %v1385_v27, %v1380_v23 }
 0x27d   : > { %v693_v38 = vpop.f32.mrf.mxu1 }
 0x27e   : > { %v694_v56 = vadd.f32 %v693_v38, %v597_v36 }
 0x27f   : > { %v695_v42 = vpop.f32.mrf.mxu1 }
 0x280   : > { %v696_v63 = vadd.f32 %v695_v42, %v597_v36  ;;  %v736_v7 = vmul.f32 %v719_v47, %v694_v56 }
 0x281   : > { %v699_v43 = vpop.f32.mrf.mxu1 }
 0x282   : > { %v700_v44 = vadd.f32 %v699_v43, %v602_v33  ;;  %v737_v16 = vmul.f32 %v719_v47, %v696_v63  ;;  %v764_v26 = vadd.f32 %v747_v5, %v736_v7  ;;  %v397_v63 = vld [vmem:[%s4484_s3 + $0x98] sm:$0xff]  ;;  %v395_v7 = vld [vmem:[%s4484_s3 + $0x88] sm:$0xff] }
 0x283   : > { %v701_v45 = vpop.f32.mrf.mxu1 }
 0x284   : > { %v738_v48 = vmul.f32 %v724_v39, %v700_v44  ;;  %v702_v49 = vadd.f32 %v701_v45, %v602_v33  ;;  %v765_v19 = vadd.f32 %v747_v5, %v737_v16  ;;  %v400_v5 = vld [vmem:[%s4484_s3 + $0xb0] sm:$0xff] }
 0x285   : > { %v705_v51 = vpop.f32.mrf.mxu1 }
 0x286   : > { %v739_v52 = vmul.f32 %v724_v39, %v702_v49  ;;  %v706_v53 = vadd.f32 %v705_v51, %v607_v31  ;;  %v766_v55 = vadd.f32 %v752_v50, %v738_v48  ;;  %v773_v8 = vmax.f32 %v765_v19, 0.0 }
 0x287   : > { %v707_v57 = vpop.f32.mrf.mxu1 }
 0x288   : > { %v740_v59 = vmul.f32 %v729_v34, %v706_v53  ;;  %v708_v60 = vadd.f32 %v707_v57, %v607_v31  ;;  %v774_v61 = vmax.f32 %v766_v55, 0.0  ;;  %v767_v62 = vadd.f32 %v752_v50, %v739_v52 }
 0x289   : > { %v711_v0 = vpop.f32.mrf.mxu1  ;;  %v1388_v31 = vadd.f32 %v1385_v27, %v1381_v28 }
 0x28a   : > { %v741_v1 = vmul.f32 %v729_v34, %v708_v60  ;;  %v712_v2 = vadd.f32 %v711_v0, %v612_v30  ;;  %792 = vrot.lane.b32.xlu0 %v774_v61, %s4497_s28  ;;  %v775_v3 = vmax.f32 %v767_v62, 0.0  ;;  %v768_v4 = vadd.f32 %v757_v40, %v740_v59  ;;  %v398_v0 = vld [vmem:[%s4484_s3 + $0xa0] sm:$0xff] }
 0x28b   : > { %v713_v10 = vpop.f32.mrf.mxu1  ;;  %v1390_v33 = vmax.f32 %v1388_v31, 0.0 }
 0x28c   : > { %v742_v11 = vmul.f32 %v734_v32, %v712_v2  ;;  %v714_v12 = vadd.f32 %v713_v10, %v612_v30  ;;  %794 = vrot.lane.b32.xlu1 %v775_v3, %s4497_s28  ;;  %v776_v13 = vmax.f32 %v768_v4, 0.0  ;;  %v769_v14 = vadd.f32 %v757_v40, %v741_v1  ;;  %v396_v1 = vld [vmem:[%s4484_s3 + $0x90] sm:$0xff]  ;;  %v402_v2 = vld [vmem:[%s4484_s3 + $0xc0] sm:$0xff]  ;;  %v401_v4 = vld [vmem:[%s4484_s3 + $0xb8] sm:$0xff] }
 0x28d   : > { %v772_v30 = vmax.f32 %v764_v26, 0.0  ;;  %v406_v3 = vld [vmem:[%s4484_s3 + $0xe0] sm:$0xff]  ;;  %v399_v10 = vld [vmem:[%s4484_s3 + $0xa8] sm:$0xff] }
 0x28e   : > { %v743_v17 = vmul.f32 %v734_v32, %v714_v12  ;;  %796 = vrot.lane.b32.xlu0 %v776_v13, %s4497_s28  ;;  %v777_v18 = vmax.f32 %v769_v14, 0.0  ;;  %v770_v20 = vadd.f32 %v762_v35, %v742_v11  ;;  %v1389_v32 = vmax.f32 %v1387_v21, 0.0  ;;  %v405_v11 = vld [vmem:[%s4484_s3 + $0xd8] sm:$0xff]  ;;  %v403_v12 = vld [vmem:[%s4484_s3 + $0xc8] sm:$0xff]  ;;  %v404_v13 = vld [vmem:[%s4484_s3 + $0xd0] sm:$0xff] }
 0x290   : > { %798 = vrot.lane.b32.xlu1 %v777_v18, %s4497_s28  ;;  %v778_v24 = vmax.f32 %v770_v20, 0.0  ;;  %v771_v25 = vadd.f32 %v762_v35, %v743_v17 }
 0x292   : > { %800 = vrot.lane.b32.xlu0 %v778_v24, %s4497_s28  ;;  %v779_v29 = vmax.f32 %v771_v25, 0.0 }
 0x294   : > { %802 = vrot.lane.b32.xlu1 %v779_v29, %s4497_s28 }
 0x296   : > { %788 = vrot.lane.b32.xlu0 %v772_v30, %s4497_s28 }
 0x298   : > { %790 = vrot.lane.b32.xlu1 %v773_v8, %s4497_s28 }
 0x29a   : > { %1393 = vrot.lane.b32.xlu0 %v1389_v32, %s4497_s28 }
 0x29c   : > { %1395 = vrot.lane.b32.xlu1 %v1390_v33, %s4497_s28 }
 0x2fc   : > { %v793_v9 = vpop.permute.xlu0 %792 }
 0x2fd   : > { %v2998_v51 = vsel %vm477_vm1, 0.0, %v793_v9 }
 0x2fe   : > { %v795_v34 = vpop.permute.xlu1 %794  ;;  %4539 = vst [vmem:[#allocation7_spill] sm:$0xff] %v2998_v51 }
 0x2ff   : > { %v3008_v53 = vsel %vm477_vm1, %v793_v9, %v795_v34  ;;  %v3011_v55 = vsel %vm477_vm1, %v795_v34, 0.0 }
 0x300   : > { %v797_v35 = vpop.permute.xlu0 %796 }
 0x301   : > { %v3018_v56 = vsel %vm477_vm1, 0.0, %v797_v35 }
 0x302   : > { %v799_v36 = vpop.permute.xlu1 %798 }
 0x303   : > { %v3021_v57 = vsel %vm477_vm1, %v799_v36, 0.0  ;;  %v3028_v59 = vsel %vm477_vm1, %v797_v35, %v799_v36 }
 0x304   : > { %v801_v38 = vpop.permute.xlu0 %800 }
 0x305   : > { %v3031_v60 = vsel %vm477_vm1, 0.0, %v801_v38 }
 0x306   : > { %v803_v39 = vpop.permute.xlu1 %802 }
 0x307   : > { %v3038_v61 = vsel %vm477_vm1, %v801_v38, %v803_v39  ;;  %v3041_v62 = vsel %vm477_vm1, %v803_v39, 0.0  ;;  %v3192_v38 = vshrl.u32 %v4499_v37, 7 }
 0x308   : > { %v789_v40 = vpop.permute.xlu0 %788 }
 0x309   : > { %v2988_v49 = vsel %vm477_vm1, 0.0, %v789_v40  ;;  %4543 = vst [vmem:[#allocation9_spill] sm:$0xff] %v3192_v38 }
 0x30a   : > { %v791_v42 = vpop.permute.xlu1 %790  ;;  %4538 = vst [vmem:[#allocation6_spill] sm:$0xff] %v2988_v49 }
 0x30b   : > { %v2991_v50 = vsel %vm477_vm1, %v791_v42, 0.0  ;;  %v3001_v52 = vsel %vm477_vm1, %v789_v40, %v791_v42 }
 0x30c   : > { %v1394_v43 = vpop.permute.xlu0 %1393  ;;  %4540 = vst [vmem:[#allocation8_spill] sm:$0xff] %v3001_v52 }
 0x30d   : > { %v2968_v48 = vsel %vm477_vm1, 0.0, %v1394_v43 }
 0x30e   : > { %v1396_v44 = vpop.permute.xlu1 %1395 }
 0x30f   : > { %v2961_v45 = vsel %vm477_vm1, %v1394_v43, %v1396_v44  ;;  %v1402_v47 = vsel %vm477_vm1, %v1396_v44, 0.0 }
 0x310   : > { %1459 = vrot.lane.b32.xlu1 %v1402_v47, %s4495_s29  ;;  %1457 = vrot.lane.b32.xlu0 %v2961_v45, %s4495_s29 }
 0x314   : > { %1489 = vrot.lane.b32.xlu1 %v2961_v45, %s2657_s11  ;;  %1455 = vrot.lane.b32.xlu0 %v2968_v48, %s4495_s29 }
 0x318   : > { %1487 = vrot.lane.b32.xlu1 %v2968_v48, %s2657_s11  ;;  %1491 = vrot.lane.b32.xlu0 %v1402_v47, %s2657_s11 }
 0x31c   : > { %1447 = vrot.lane.b32.xlu1 %v1402_v47, %s2658_s12  ;;  %1445 = vrot.lane.b32.xlu0 %v2961_v45, %s2658_s12 }
 0x320   : > { %1433 = vrot.lane.b32.xlu1 %v2961_v45, %s2659_s13  ;;  %1443 = vrot.lane.b32.xlu0 %v2968_v48, %s2658_s12 }
 0x324   : > { %1431 = vrot.lane.b32.xlu1 %v2968_v48, %s2659_s13  ;;  %1435 = vrot.lane.b32.xlu0 %v1402_v47, %s2659_s13 }
 0x328   : > { %1036 = vrot.lane.b32.xlu1 %v2988_v49, %s4495_s29  ;;  %1040 = vrot.lane.b32.xlu0 %v2991_v50, %s4495_s29 }
 0x32c   : > { %1038 = vrot.lane.b32.xlu1 %v3001_v52, %s4495_s29  ;;  %1042 = vrot.lane.b32.xlu0 %v2998_v51, %s4495_s29 }
 0x330   : > { %1046 = vrot.lane.b32.xlu1 %v3011_v55, %s4495_s29  ;;  %1044 = vrot.lane.b32.xlu0 %v3008_v53, %s4495_s29 }
 0x334   : > { %1048 = vrot.lane.b32.xlu1 %v3018_v56, %s4495_s29  ;;  %1052 = vrot.lane.b32.xlu0 %v3021_v57, %s4495_s29 }
 0x338   : > { %1050 = vrot.lane.b32.xlu1 %v3028_v59, %s4495_s29  ;;  %1054 = vrot.lane.b32.xlu0 %v3031_v60, %s4495_s29 }
 0x33c   : > { %1058 = vrot.lane.b32.xlu1 %v3041_v62, %s4495_s29  ;;  %1056 = vrot.lane.b32.xlu0 %v3038_v61, %s4495_s29 }
 0x340   : > { %1481 = vrot.lane.b32.xlu1 %v1402_v47, %s2660_s14  ;;  %1479 = vrot.lane.b32.xlu0 %v2961_v45, %s2660_s14 }
 0x344   : > { %1421 = vrot.lane.b32.xlu1 %v2961_v45, %s2661_s15  ;;  %1477 = vrot.lane.b32.xlu0 %v2968_v48, %s2660_s14 }
 0x348   : > { %1419 = vrot.lane.b32.xlu1 %v2968_v48, %s2661_s15  ;;  %1423 = vrot.lane.b32.xlu0 %v1402_v47, %s2661_s15 }
 0x34c   : > { %1411 = vrot.lane.b32.xlu1 %v1402_v47, %s4541_s25  ;;  %1409 = vrot.lane.b32.xlu0 %v2961_v45, %s4541_s25 }
 0x350   : > { %1469 = vrot.lane.b32.xlu1 %v2961_v45, %s4542_s26  ;;  %1407 = vrot.lane.b32.xlu0 %v2968_v48, %s4541_s25 }
 0x354   : > { %1467 = vrot.lane.b32.xlu1 %v2968_v48, %s4542_s26  ;;  %1471 = vrot.lane.b32.xlu0 %v1402_v47, %s4542_s26  ;;  %v1220_v47 = vsub.s32 2, %v3192_v38 }
 0x358   : > { %1509 = vperm.xlu1 %2613, %v397_v63   ;;  %1514 = vperm.xlu0 %2612, %v398_v0   ;;  %v3212_v0 = vld [vmem:[%s4486_s5] sm:$0x7] }
 0x359   : > { %4544 = vst [vmem:[#allocation10_spill] sm:$0xff] %v3212_v0 }
 0x35c   : > { %1504 = vperm.xlu1 %2613, %v396_v1   ;;  %1635 = vperm.xlu0 %2612, %v402_v2  }
 0x360   : > { %1663 = vperm.xlu1 %2613, %v406_v3   ;;  %1630 = vperm.xlu0 %2612, %v401_v4  }
 0x364   : > { %1625 = vperm.xlu1 %2613, %v400_v5   ;;  %1499 = vperm.xlu0 %2612, %v395_v7   ;;  %v1221_v7 = vrot.slane %v3212_v0, %v1220_v47 }
 0x368   : > { %1620 = vperm.xlu1 %2613, %v399_v10   ;;  %1658 = vperm.xlu0 %2612, %v405_v11  }
 0x36c   : > { %1648 = vperm.xlu1 %2613, %v403_v12   ;;  %1653 = vperm.xlu0 %2612, %v404_v13  }
 0x370   : > { %846 = vrot.lane.b32.xlu1 %v3001_v52, %s4541_s25  ;;  %844 = vrot.lane.b32.xlu0 %v2988_v49, %s4541_s25 }
 0x374   : > { %906 = vrot.lane.b32.xlu1 %v3028_v59, %s2661_s15  ;;  %910 = vrot.lane.b32.xlu0 %v3031_v60, %s2661_s15 }
 0x378   : > { %904 = vrot.lane.b32.xlu1 %v3018_v56, %s2661_s15  ;;  %908 = vrot.lane.b32.xlu0 %v3021_v57, %s2661_s15 }
 0x37c   : > { %902 = vrot.lane.b32.xlu1 %v3011_v55, %s2661_s15  ;;  %900 = vrot.lane.b32.xlu0 %v3008_v53, %s2661_s15 }
 0x380   : > { %894 = vrot.lane.b32.xlu1 %v3001_v52, %s2661_s15  ;;  %898 = vrot.lane.b32.xlu0 %v2998_v51, %s2661_s15 }
 0x382   : > { %v3123_v14 = vpop.permute.xlu1 %1459  ;;  %v3125_v15 = vpop.permute.xlu0 %1457 }
 0x383   : > { %v1462_v11 = vsel %vm554_vm2, %v3125_v15, %v3123_v14 }
 0x384   : > { %892 = vrot.lane.b32.xlu1 %v2988_v49, %s2661_s15  ;;  %896 = vrot.lane.b32.xlu0 %v2991_v50, %s2661_s15 }
 0x386   : > { %v3131_v16 = vpop.permute.xlu1 %1489  ;;  %v3133_v17 = vpop.permute.xlu0 %1455 }
 0x387   : > { %v1461_v12 = vsel %vm554_vm2, %v3133_v17, %v3125_v15 }
 0x388   : > { %858 = vrot.lane.b32.xlu1 %v3028_v59, %s4541_s25  ;;  %862 = vrot.lane.b32.xlu0 %v3031_v60, %s4541_s25 }
 0x38a   : > { %v3139_v18 = vpop.permute.xlu1 %1487  ;;  %v3141_v20 = vpop.permute.xlu0 %1491 }
 0x38b   : > { %v1494_v14 = vsel %vm589_vm5, %v3131_v16, %v3141_v20 }
 0x38c   : > { %856 = vrot.lane.b32.xlu1 %v3018_v56, %s4541_s25  ;;  %860 = vrot.lane.b32.xlu0 %v3021_v57, %s4541_s25 }
 0x38e   : > { %v3147_v23 = vpop.permute.xlu1 %1447  ;;  %v3149_v24 = vpop.permute.xlu0 %1445 }
 0x38f   : > { %v1450_v15 = vsel %vm541_vm6, %v3149_v24, %v3147_v23 }
 0x390   : > { %854 = vrot.lane.b32.xlu1 %v3011_v55, %s4541_s25  ;;  %852 = vrot.lane.b32.xlu0 %v3008_v53, %s4541_s25 }
 0x392   : > { %v3155_v25 = vpop.permute.xlu1 %1433  ;;  %v3157_v26 = vpop.permute.xlu0 %1443 }
 0x393   : > { %v1449_v17 = vsel %vm541_vm6, %v3157_v26, %v3149_v24 }
 0x394   : > { %848 = vrot.lane.b32.xlu1 %v2991_v50, %s4541_s25  ;;  %850 = vrot.lane.b32.xlu0 %v2998_v51, %s4541_s25 }
 0x396   : > { %v3163_v27 = vpop.permute.xlu1 %1431  ;;  %v3165_v28 = vpop.permute.xlu0 %1435 }
 0x397   : > { %v1438_v20 = vsel %vm528_vm9, %v3155_v25, %v3165_v28  ;;  %v1437_v23 = vsel %vm528_vm9, %v3163_v27, %v3155_v25 }
 0x398   : > { %1098 = vrot.lane.b32.xlu1 %v3028_v59, %s4542_s26  ;;  %1102 = vrot.lane.b32.xlu0 %v3031_v60, %s4542_s26 }
 0x39a   : > { %v1037_v29 = vpop.permute.xlu1 %1036  ;;  %v1041_v19 = vpop.permute.xlu0 %1040 }
 0x39c   : > { %1096 = vrot.lane.b32.xlu1 %v3018_v56, %s4542_s26  ;;  %1100 = vrot.lane.b32.xlu0 %v3021_v57, %s4542_s26 }
 0x39e   : > { %v1039_v21 = vpop.permute.xlu1 %1038  ;;  %v1043_v30 = vpop.permute.xlu0 %1042 }
 0x39f   : > { %v1061_v4 = vsel %vm554_vm2, %v1039_v21, %v1041_v19  ;;  %v1060_v10 = vsel %vm554_vm2, %v1037_v29, %v1039_v21  ;;  %v1493_v19 = vsel %vm589_vm5, %v3139_v18, %v3131_v16 }
 0x3a0   : > { %1094 = vrot.lane.b32.xlu1 %v3011_v55, %s4542_s26  ;;  %1092 = vrot.lane.b32.xlu0 %v3008_v53, %s4542_s26 }
 0x3a2   : > { %v1047_v31 = vpop.permute.xlu1 %1046  ;;  %v1045_v8 = vpop.permute.xlu0 %1044 }
 0x3a3   : > { %v1063_v1 = vsel %vm554_vm2, %v1045_v8, %v1047_v31  ;;  %v1062_v2 = vsel %vm554_vm2, %v1043_v30, %v1045_v8 }
 0x3a4   : > { %1086 = vrot.lane.b32.xlu1 %v3001_v52, %s4542_s26  ;;  %1090 = vrot.lane.b32.xlu0 %v2998_v51, %s4542_s26 }
 0x3a6   : > { %v1049_v32 = vpop.permute.xlu1 %1048  ;;  %v1053_v33 = vpop.permute.xlu0 %1052 }
 0x3a8   : > { %1084 = vrot.lane.b32.xlu1 %v2988_v49, %s4542_s26  ;;  %1088 = vrot.lane.b32.xlu0 %v2991_v50, %s4542_s26 }
 0x3aa   : > { %v1051_v9 = vpop.permute.xlu1 %1050  ;;  %v1055_v34 = vpop.permute.xlu0 %1054 }
 0x3ab   : > { %v1065_v43 = vsel %vm554_vm2, %v1051_v9, %v1053_v33  ;;  %v1064_v63 = vsel %vm554_vm2, %v1049_v32, %v1051_v9 }
 0x3ac   : > { %1178 = vrot.lane.b32.xlu1 %v3028_v59, %s2657_s11  ;;  %1182 = vrot.lane.b32.xlu0 %v3031_v60, %s2657_s11 }
 0x3ae   : > { %v1059_v35 = vpop.permute.xlu1 %1058  ;;  %v1057_v36 = vpop.permute.xlu0 %1056 }
 0x3af   : > { %v1067_v39 = vsel %vm554_vm2, %v1057_v36, %v1059_v35  ;;  %v1066_v40 = vsel %vm554_vm2, %v1055_v34, %v1057_v36  ;;  %v1369_v34 = vld [vmem:[%s4487_s6] sm:$0xff]  ;;  %v1370_v35 = vld [vmem:[%s4487_s6 + $0x8] sm:$0xff] }
 0x3b0   : > { %1176 = vrot.lane.b32.xlu1 %v3018_v56, %s2657_s11  ;;  %1180 = vrot.lane.b32.xlu0 %v3021_v57, %s2657_s11 }
 0x3b1   : > { %2499 = vmatprep.subr.msk.mxu0 %vm2871_vm3, %v1067_v39  ;;  %v1372_v39 = vld [vmem:[%s4487_s6 + $0x18] sm:$0xff] }
 0x3b2   : > { %2500 = vmatpush1.msk.msra.mxu0 %vm2878_vm4, %v1066_v40  ;;  %v1482_v42 = vpop.permute.xlu1 %1481  ;;  %v1480_v44 = vpop.permute.xlu0 %1479 }
 0x3b3   : > { %2501 = vmatprep.subr.msk.mxu0 %vm2871_vm3, %v1065_v43  ;;  %v1484_v24 = vsel %vm578_vm10, %v1480_v44, %v1482_v42 }
 0x3b4   : > { %2502 = vmatpush1.msk.msra.mxu0 %vm2878_vm4, %v1064_v63  ;;  %1174 = vrot.lane.b32.xlu1 %v3011_v55, %s2657_s11 }
 0x3b5   : > { %1172 = vrot.lane.b32.xlu0 %v3008_v53, %s2657_s11  ;;  %2503 = vmatprep.subr.msk.mxu0 %vm2871_vm3, %v1063_v1 }
 0x3b6   : > { %2504 = vmatpush1.msk.msra.mxu0 %vm2878_vm4, %v1062_v2  ;;  %v1422_v3 = vpop.permute.xlu1 %1421  ;;  %v1478_v5 = vpop.permute.xlu0 %1477 }
 0x3b7   : > { %2505 = vmatprep.subr.msk.mxu0 %vm2871_vm3, %v1061_v4  ;;  %v1483_v26 = vsel %vm578_vm10, %v1478_v5, %v1480_v44 }
 0x3b8   : > { %2506 = vmatpush1.msk.msra.mxu0 %vm2878_vm4, %v1060_v10  ;;  %1168 = vrot.lane.b32.xlu1 %v2991_v50, %s2657_s11 }
 0x3b9   : > { %1170 = vrot.lane.b32.xlu0 %v2998_v51, %s2657_s11  ;;  %2508 = vmatprep.subr.msk.mxu0 %vm2871_vm3, %v1462_v11 }
 0x3ba   : > { %2507 = vmatmul.mubr.msk.f32.vlgmr.msra.gmra.mxu0 %vm1224_vm15, %v1221_v7  ;;  %v1420_v13 = vpop.permute.xlu1 %1419  ;;  %v1424_v29 = vpop.permute.xlu0 %1423 }
 0x3bb   : > { %2509 = vmatpush1.msk.msra.mxu0 %vm2878_vm4, %v1461_v12  ;;  %1593 = vmatprep.mubr.f32.mxu0 %v4500_v22  ;;  %v1426_v25 = vsel %vm515_vm11, %v1422_v3, %v1424_v29  ;;  %v1425_v27 = vsel %vm515_vm11, %v1420_v13, %v1422_v3 }
 0x3bc   : > { %1545 = vmatprep.subr.mxu0 %v1494_v14  ;;  %1004 = vrot.lane.b32.xlu1 %v3021_v57, %s2658_s12 }
 0x3bd   : > { %1546 = vmatpush1.msra.mxu0 %v1493_v19  ;;  %1166 = vrot.lane.b32.xlu0 %v3001_v52, %s2657_s11 }
 0x3be   : > { %2510 = vmatprep.subr.msk.mxu0 %vm2887_vm7, %v1450_v15  ;;  %v1412_v16 = vpop.permute.xlu1 %1411  ;;  %v1410_v18 = vpop.permute.xlu0 %1409 }
 0x3bf   : > { %2511 = vmatpush1.msk.msra.mxu0 %vm2894_vm8, %v1449_v17  ;;  %v1414_v31 = vsel %vm502_vm12, %v1410_v18, %v1412_v16 }
 0x3c0   : > { %2512 = vmatprep.subr.msk.mxu0 %vm2871_vm3, %v1438_v20  ;;  %998 = vrot.lane.b32.xlu1 %v3011_v55, %s2658_s12 }
 0x3c1   : > { %2513 = vmatpush1.msk.msra.mxu0 %vm2878_vm4, %v1437_v23  ;;  %1164 = vrot.lane.b32.xlu0 %v2988_v49, %s2657_s11 }
 0x3c2   : > { %1551 = vmatprep.subr.mxu0 %v1484_v24  ;;  %v1470_v28 = vpop.permute.xlu1 %1469  ;;  %v1408_v21 = vpop.permute.xlu0 %1407 }
 0x3c3   : > { %1552 = vmatpush1.msra.mxu0 %v1483_v26  ;;  %v1413_v30 = vsel %vm502_vm12, %v1408_v21, %v1410_v18 }
 0x3c4   : > { %2514 = vmatprep.subr.msk.mxu0 %vm2887_vm7, %v1426_v25  ;;  %992 = vrot.lane.b32.xlu1 %v2991_v50, %s2658_s12 }
 0x3c5   : > { %2515 = vmatpush1.msk.msra.mxu0 %vm2894_vm8, %v1425_v27  ;;  %1006 = vrot.lane.b32.xlu0 %v3031_v60, %s2658_s12 }
 0x3c6   : > { %2516 = vmatprep.subr.msk.mxu0 %vm2871_vm3, %v1414_v31  ;;  %v1468_v8 = vpop.permute.xlu1 %1467  ;;  %v1472_v32 = vpop.permute.xlu0 %1471 }
 0x3c7   : > { %2517 = vmatpush1.msk.msra.mxu0 %vm2878_vm4, %v1413_v30  ;;  %v1473_v33 = vsel %vm567_vm13, %v1468_v8, %v1470_v28  ;;  %v1474_v9 = vsel %vm567_vm13, %v1470_v28, %v1472_v32 }
 0x3c8   : > { %956 = vrot.lane.b32.xlu1 %v3021_v57, %s2659_s13  ;;  %1557 = vmatprep.subr.mxu0 %v1474_v9 }
 0x3c9   : > { %1002 = vrot.lane.b32.xlu0 %v3028_v59, %s2658_s12  ;;  %1558 = vmatpush1.msra.mxu0 %v1473_v33 }
 0x3ca   : > { %2518 = vmatprep.subr.msk.mxu0 %vm2887_vm7, %v2961_v45  ;;  %v1371_v45 = vld [vmem:[%s4487_s6 + $0x10] sm:$0xff] }
 0x3cb   : > { %2519 = vmatpush1.msk.msra.mxu0 %vm2894_vm8, %v2968_v48 }
 0x3cc   : > { %950 = vrot.lane.b32.xlu1 %v3011_v55, %s2659_s13  ;;  %2520 = vmatmul.mubr.msk.f32.vlgmr.msra.gmra.mxu0 %vm614_vm14, %v1369_v34 }
 0x3cd   : > { %1000 = vrot.lane.b32.xlu0 %v3018_v56, %s2658_s12  ;;  %1599 = vmatprep.mubr.f32.mxu0 %v4500_v22 }
 0x3d0   : > { %944 = vrot.lane.b32.xlu1 %v2991_v50, %s2659_s13  ;;  %2521 = vmatmul.mubr.msk.f32.gmra.mxu0 %vm614_vm14, %v1370_v35 }
 0x3d1   : > { %996 = vrot.lane.b32.xlu0 %v3008_v53, %s2658_s12  ;;  %1605 = vmatprep.mubr.f32.mxu0 %v4500_v22 }
 0x3d3   : > { %v3334_v48 = vpop.permute.xlu1 %1509  ;;  %v3336_v36 = vpop.permute.xlu0 %1514 }
 0x3d4   : > { %1140 = vrot.lane.b32.xlu1 %v3021_v57, %s2660_s14  ;;  %2522 = vmatmul.mubr.msk.f32.gmra.mxu0 %vm614_vm14, %v1371_v45 }
 0x3d5   : > { %994 = vrot.lane.b32.xlu0 %v2998_v51, %s2658_s12  ;;  %1611 = vmatprep.mubr.f32.mxu0 %v4500_v22 }
 0x3d7   : > { %v3347_v40 = vpop.permute.xlu1 %1504  ;;  %v3349_v42 = vpop.permute.xlu0 %1635 }
 0x3d8   : > { %1134 = vrot.lane.b32.xlu1 %v3011_v55, %s2660_s14  ;;  %2523 = vmatmul.mubr.msk.f32.gmra.mxu0 %vm614_vm14, %v1372_v39 }
 0x3d9   : > { %990 = vrot.lane.b32.xlu0 %v3001_v52, %s2658_s12 }
 0x3db   : > { %v3356_v57 = vpop.permute.xlu1 %1663  ;;  %v3358_v43 = vpop.permute.xlu0 %1630 }
 0x3dc   : > { %1126 = vrot.lane.b32.xlu1 %v3001_v52, %s2660_s14 }
 0x3dd   : > { %988 = vrot.lane.b32.xlu0 %v2988_v49, %s2658_s12 }
 0x3df   : > { %v3364_v44 = vpop.permute.xlu1 %1625  ;;  %v3366_v47 = vpop.permute.xlu0 %1499 }
 0x3e0   : > { %1124 = vrot.lane.b32.xlu1 %v2988_v49, %s2660_s14 }
 0x3e1   : > { %958 = vrot.lane.b32.xlu0 %v3031_v60, %s2659_s13 }
 0x3e3   : > { %v3372_v55 = vpop.permute.xlu1 %1620  ;;  %v3374_v63 = vpop.permute.xlu0 %1658 }
 0x3e4   : > { %914 = vrot.lane.b32.xlu1 %v3041_v62, %s2661_s15 }
 0x3e5   : > { %954 = vrot.lane.b32.xlu0 %v3028_v59, %s2659_s13 }
 0x3e7   : > { %v3380_v1 = vpop.permute.xlu1 %1648  ;;  %v3382_v2 = vpop.permute.xlu0 %1653 }
 0x3e8   : > { %866 = vrot.lane.b32.xlu1 %v3041_v62, %s4541_s25 }
 0x3e9   : > { %952 = vrot.lane.b32.xlu0 %v3018_v56, %s2659_s13 }
 0x3eb   : > { %v3388_v3 = vpop.permute.xlu1 %846  ;;  %v3390_v4 = vpop.permute.xlu0 %844 }
 0x3ec   : > { %1106 = vrot.lane.b32.xlu1 %v3041_v62, %s4542_s26 }
 0x3ed   : > { %948 = vrot.lane.b32.xlu0 %v3008_v53, %s2659_s13 }
 0x3ef   : > { %v3396_v5 = vpop.permute.xlu1 %906  ;;  %v3398_v7 = vpop.permute.xlu0 %910 }
 0x3f0   : > { %1186 = vrot.lane.b32.xlu1 %v3041_v62, %s2657_s11 }
 0x3f1   : > { %946 = vrot.lane.b32.xlu0 %v2998_v51, %s2659_s13 }
 0x3f3   : > { %v3404_v10 = vpop.permute.xlu1 %904  ;;  %v3406_v11 = vpop.permute.xlu0 %908 }
 0x3f4   : > { %1010 = vrot.lane.b32.xlu1 %v3041_v62, %s2658_s12 }
 0x3f5   : > { %942 = vrot.lane.b32.xlu0 %v3001_v52, %s2659_s13 }
 0x3f7   : > { %v3412_v12 = vpop.permute.xlu1 %902  ;;  %v3414_v13 = vpop.permute.xlu0 %900 }
 0x3f8   : > { %962 = vrot.lane.b32.xlu1 %v3041_v62, %s2659_s13 }
 0x3f9   : > { %940 = vrot.lane.b32.xlu0 %v2988_v49, %s2659_s13 }
 0x3fb   : > { %v3420_v29 = vpop.permute.xlu1 %894  ;;  %v3422_v14 = vpop.permute.xlu0 %898 }
 0x3fc   : > { %1146 = vrot.lane.b32.xlu1 %v3041_v62, %s2660_s14 }
 0x3fd   : > { %1142 = vrot.lane.b32.xlu0 %v3031_v60, %s2660_s14 }
 0x3ff   : > { %v3428_v19 = vpop.permute.xlu1 %892  ;;  %v3430_v15 = vpop.permute.xlu0 %896 }
 0x401   : > { %1138 = vrot.lane.b32.xlu0 %v3028_v59, %s2660_s14 }
 0x403   : > { %v3434_v17 = vpop.permute.xlu0 %862  ;;  %v3436_v16 = vpop.permute.xlu1 %858 }
 0x405   : > { %1136 = vrot.lane.b32.xlu0 %v3018_v56, %s2660_s14 }
 0x407   : > { %v3440_v18 = vpop.permute.xlu0 %860  ;;  %v3444_v62 = vpop.permute.xlu1 %856 }
 0x409   : > { %1132 = vrot.lane.b32.xlu0 %v3008_v53, %s2660_s14 }
 0x40b   : > { %v3446_v20 = vpop.permute.xlu0 %852  ;;  %v3452_v24 = vpop.permute.xlu1 %854 }
 0x40d   : > { %1130 = vrot.lane.b32.xlu0 %v2998_v51, %s2660_s14 }
 0x40f   : > { %v3450_v23 = vpop.permute.xlu0 %850  ;;  %v3460_v28 = vpop.permute.xlu1 %848 }
 0x411   : > { %1128 = vrot.lane.b32.xlu0 %v2991_v50, %s2660_s14 }
 0x413   : > { %v3456_v26 = vpop.permute.xlu0 %1102  ;;  %v3468_v27 = vpop.permute.xlu1 %1098 }
 0x415   : > { %912 = vrot.lane.b32.xlu0 %v3038_v61, %s2661_s15 }
 0x417   : > { %v3462_v21 = vpop.permute.xlu0 %1100  ;;  %v3476_v30 = vpop.permute.xlu1 %1096 }
 0x419   : > { %864 = vrot.lane.b32.xlu0 %v3038_v61, %s4541_s25 }
 0x41b   : > { %v3466_v25 = vpop.permute.xlu0 %1092  ;;  %v3484_v32 = vpop.permute.xlu1 %1094 }
 0x41d   : > { %1104 = vrot.lane.b32.xlu0 %v3038_v61, %s4542_s26 }
 0x41f   : > { %v3472_v50 = vpop.permute.xlu0 %1090  ;;  %v3492_v9 = vpop.permute.xlu1 %1086 }
 0x421   : > { %1184 = vrot.lane.b32.xlu0 %v3038_v61, %s2657_s11 }
 0x423   : > { %v3478_v31 = vpop.permute.xlu0 %1088  ;;  %v3498_v45 = vpop.permute.xlu1 %1084 }
 0x425   : > { %1008 = vrot.lane.b32.xlu0 %v3038_v61, %s2658_s12 }
 0x427   : > { %v3482_v8 = vpop.permute.xlu0 %1182  ;;  %v3502_v37 = vpop.permute.xlu1 %1178 }
 0x428   : > { %4545 = vst [vmem:[#allocation11_spill] sm:$0xff] %v3482_v8  ;;  %4550 = vst [vmem:[#allocation16_spill] sm:$0xff] %v3502_v37 }
 0x429   : > { %960 = vrot.lane.b32.xlu0 %v3038_v61, %s2659_s13 }
 0x42b   : > { %v3488_v33 = vpop.permute.xlu0 %1180  ;;  %v3508_v0 = vpop.permute.xlu1 %1176 }
 0x42c   : > { %4546 = vst [vmem:[#allocation12_spill] sm:$0xff] %v3488_v33  ;;  %4553 = vst [vmem:[#allocation19_spill] sm:$0xff] %v3508_v0 }
 0x42d   : > { %1144 = vrot.lane.b32.xlu0 %v3038_v61, %s2660_s14 }
 0x42f   : > { %v3494_v34 = vpop.permute.xlu0 %1172  ;;  %v3512_v33 = vpop.permute.xlu1 %1174 }
 0x430   : > { %4547 = vst [vmem:[#allocation13_spill] sm:$0xff] %v3494_v34  ;;  %4555 = vst [vmem:[#allocation21_spill] sm:$0xff] %v3512_v33 }
 0x433   : > { %v3496_v35 = vpop.permute.xlu0 %1170 }
 0x434   : > { %4548 = vst [vmem:[#allocation14_spill] sm:$0xff] %v3496_v35  ;;  %v3518_v35 = vpop.permute.xlu1 %1168 }
 0x435   : > { %4558 = vst [vmem:[#allocation24_spill] sm:$0xff] %v3518_v35 }
 0x437   : > { %v3500_v39 = vpop.permute.xlu0 %1166 }
 0x438   : > { %4549 = vst [vmem:[#allocation15_spill] sm:$0xff] %v3500_v39  ;;  %v3522_v39 = vpop.permute.xlu1 %1004 }
 0x439   : > { %4560 = vst [vmem:[#allocation26_spill] sm:$0xff] %v3522_v39 }
 0x43b   : > { %v3504_v22 = vpop.permute.xlu0 %1164 }
 0x43c   : > { %4551 = vst [vmem:[#allocation17_spill] sm:$0xff] %v3504_v22 }
 0x43f   : > { %v3506_v6 = vpop.permute.xlu0 %1006 }
 0x440   : > { %4552 = vst [vmem:[#allocation18_spill] sm:$0xff] %v3506_v6  ;;  %v3528_v6 = vpop.permute.xlu1 %998 }
 0x441   : > { %4563 = vst [vmem:[#allocation29_spill] sm:$0xff] %v3528_v6 }
 0x443   : > { %v3510_v38 = vpop.permute.xlu0 %1002 }
 0x444   : > { %4554 = vst [vmem:[#allocation20_spill] sm:$0xff] %v3510_v38  ;;  %v3532_v38 = vpop.permute.xlu1 %992 }
 0x445   : > { %4565 = vst [vmem:[#allocation31_spill] sm:$0xff] %v3532_v38 }
 0x447   : > { %v3514_v8 = vpop.permute.xlu0 %1000 }
 0x448   : > { %4556 = vst [vmem:[#allocation22_spill] sm:$0xff] %v3514_v8 }
 0x44b   : > { %v3516_v34 = vpop.permute.xlu0 %996 }
 0x44c   : > { %4557 = vst [vmem:[#allocation23_spill] sm:$0xff] %v3516_v34  ;;  %v3538_v34 = vpop.permute.xlu1 %956 }
 0x44d   : > { %4568 = vst [vmem:[#allocation34_spill] sm:$0xff] %v3538_v34 }
 0x44f   : > { %v3520_v49 = vpop.permute.xlu0 %994 }
 0x450   : > { %4559 = vst [vmem:[#allocation25_spill] sm:$0xff] %v3520_v49  ;;  %v3542_v49 = vpop.permute.xlu1 %950 }
 0x451   : > { %4570 = vst [vmem:[#allocation36_spill] sm:$0xff] %v3542_v49 }
 0x453   : > { %v3524_v37 = vpop.permute.xlu0 %990 }
 0x454   : > { %4561 = vst [vmem:[#allocation27_spill] sm:$0xff] %v3524_v37 }
 0x457   : > { %v3526_v22 = vpop.permute.xlu0 %988 }
 0x458   : > { %4562 = vst [vmem:[#allocation28_spill] sm:$0xff] %v3526_v22  ;;  %v3548_v22 = vpop.permute.xlu1 %944 }
 0x459   : > { %4573 = vst [vmem:[#allocation39_spill] sm:$0xff] %v3548_v22 }
 0x45b   : > { %v3530_v0 = vpop.permute.xlu0 %958 }
 0x45c   : > { %4564 = vst [vmem:[#allocation30_spill] sm:$0xff] %v3530_v0  ;;  %v3552_v0 = vpop.permute.xlu1 %1140 }
 0x45d   : > { %4575 = vst [vmem:[#allocation41_spill] sm:$0xff] %v3552_v0 }
 0x45f   : > { %v3534_v33 = vpop.permute.xlu0 %954 }
 0x460   : > { %4566 = vst [vmem:[#allocation32_spill] sm:$0xff] %v3534_v33 }
 0x463   : > { %v3536_v8 = vpop.permute.xlu0 %952 }
 0x464   : > { %4567 = vst [vmem:[#allocation33_spill] sm:$0xff] %v3536_v8  ;;  %v3558_v8 = vpop.permute.xlu1 %1134 }
 0x465   : > { %4578 = vst [vmem:[#allocation44_spill] sm:$0xff] %v3558_v8 }
 0x467   : > { %v3540_v35 = vpop.permute.xlu0 %948 }
 0x468   : > { %4569 = vst [vmem:[#allocation35_spill] sm:$0xff] %v3540_v35  ;;  %v3562_v35 = vpop.permute.xlu1 %1126 }
 0x469   : > { %4580 = vst [vmem:[#allocation46_spill] sm:$0xff] %v3562_v35 }
 0x46b   : > { %v3544_v39 = vpop.permute.xlu0 %946 }
 0x46c   : > { %4571 = vst [vmem:[#allocation37_spill] sm:$0xff] %v3544_v39  ;;  %v3570_v22 = vpop.permute.xlu1 %1124 }
 0x46d   : > { %4584 = vst [vmem:[#allocation50_spill] sm:$0xff] %v3570_v22 }
 0x46f   : > { %v3546_v37 = vpop.permute.xlu0 %942 }
 0x470   : > { %4572 = vst [vmem:[#allocation38_spill] sm:$0xff] %v3546_v37  ;;  %v915_v52 = vpop.permute.xlu1 %914 }
 0x473   : > { %v3550_v6 = vpop.permute.xlu0 %940 }
 0x474   : > { %4574 = vst [vmem:[#allocation40_spill] sm:$0xff] %v3550_v6 }
 0x477   : > { %v3554_v38 = vpop.permute.xlu0 %1142 }
 0x478   : > { %4576 = vst [vmem:[#allocation42_spill] sm:$0xff] %v3554_v38 }
 0x47a   : > { %v3566_v39 = vpop.f32.mrf.mxu0 }
 0x47b   : > { %v3556_v33 = vpop.permute.xlu0 %1138  ;;  %4582 = vst [vmem:[#allocation48_spill] sm:$0xff] %v3566_v39 }
 0x47c   : > { %4577 = vst [vmem:[#allocation43_spill] sm:$0xff] %v3556_v33  ;;  %v3572_v6 = vpop.f32.mrf.mxu0 }
 0x47d   : > { %4585 = vst [vmem:[#allocation51_spill] sm:$0xff] %v3572_v6 }
 0x47f   : > { %v3560_v34 = vpop.permute.xlu0 %1136 }
 0x480   : > { %4579 = vst [vmem:[#allocation45_spill] sm:$0xff] %v3560_v34 }
 0x483   : > { %v3564_v49 = vpop.permute.xlu0 %1132 }
 0x484   : > { %4581 = vst [vmem:[#allocation47_spill] sm:$0xff] %v3564_v49 }
 0x487   : > { %v3568_v37 = vpop.permute.xlu0 %1130 }
 0x488   : > { %4583 = vst [vmem:[#allocation49_spill] sm:$0xff] %v3568_v37 }
 0x48b   : > { %v3574_v0 = vpop.permute.xlu0 %1128 }
 0x48c   : > { %4586 = vst [vmem:[#allocation52_spill] sm:$0xff] %v3574_v0  ;;  %v1595_v38 = vpop.f32.mrf.mxu0 }
 0x48d   : > { %v1596_v33 = vadd.f32 %v1595_v38, %v3366_v47  ;;  %v920_v38 = vsel %vm515_vm11, %v3404_v10, %v3396_v5 }
 0x48e   : > { %v1597_v8 = vpop.f32.mrf.mxu0 }
 0x48f   : > { %v1638_v34 = vmul.f32 %v3372_v55, %v1596_v33  ;;  %v1598_v35 = vadd.f32 %v1597_v8, %v3366_v47  ;;  %v913_v49 = vpop.permute.xlu0 %912  ;;  %v921_v47 = vsel %vm515_vm11, %v3396_v5, %v3406_v11  ;;  %v916_v11 = vsel %vm515_vm11, %v3428_v19, %v3420_v29 }
 0x490   : > { %v922_v39 = vsel %vm515_vm11, %v3398_v7, %v913_v49  ;;  %v1601_v37 = vpop.f32.mrf.mxu0  ;;  %v923_v22 = vsel %vm515_vm11, %v913_v49, %v915_v52 }
 0x491   : > { %v1666_v6 = vadd.f32 %v3380_v1, %v1638_v34  ;;  %v1639_v0 = vmul.f32 %v3372_v55, %v1598_v35  ;;  %v1602_v51 = vadd.f32 %v1601_v37, %v3347_v40  ;;  %2459 = vmatprep.subr.msk.mxu1 %vm2887_vm7, %v923_v22  ;;  %v918_v22 = vsel %vm515_vm11, %v3422_v14, %v3414_v13 }
 0x492   : > { %2460 = vmatpush1.msk.msra.mxu1 %vm2894_vm8, %v922_v39  ;;  %v1603_v49 = vpop.f32.mrf.mxu0 }
 0x493   : > { %v1674_v52 = vmax.f32 %v1666_v6, 0.0  ;;  %v1667_v55 = vadd.f32 %v3380_v1, %v1639_v0  ;;  %v1640_v37 = vmul.f32 %v3364_v44, %v1602_v51  ;;  %v1604_v7 = vadd.f32 %v1603_v49, %v3347_v40  ;;  %2461 = vmatprep.subr.msk.mxu1 %vm2887_vm7, %v921_v47  ;;  %v865_v1 = vpop.permute.xlu0 %864 }
 0x494   : > { %2462 = vmatpush1.msk.msra.mxu1 %vm2894_vm8, %v920_v38  ;;  %v1607_v5 = vpop.f32.mrf.mxu0  ;;  %v919_v6 = vsel %vm515_vm11, %v3414_v13, %v3412_v12  ;;  %v917_v12 = vsel %vm515_vm11, %v3420_v29, %v3430_v15  ;;  %v867_v13 = vpop.permute.xlu1 %866  ;;  %v874_v29 = vsel %vm502_vm12, %v3434_v17, %v865_v1  ;;  %v872_v17 = vsel %vm502_vm12, %v3444_v62, %v3436_v16 }
 0x495   : > { %v1675_v0 = vmax.f32 %v1667_v55, 0.0  ;;  %v1668_v51 = vadd.f32 %v3382_v2, %v1640_v37  ;;  %v1641_v40 = vmul.f32 %v3364_v44, %v1604_v7  ;;  %v1608_v10 = vadd.f32 %v1607_v5, %v3334_v48  ;;  %1690 = vrot.lane.b32.xlu0 %v1674_v52, %s4587_s20  ;;  %2463 = vmatprep.subr.msk.mxu1 %vm2887_vm7, %v919_v6 }
 0x496   : > { %2464 = vmatpush1.msk.msra.mxu1 %vm2894_vm8, %v918_v22  ;;  %v1609_v44 = vpop.f32.mrf.mxu0  ;;  %v875_v15 = vsel %vm502_vm12, %v865_v1, %v867_v13  ;;  %v873_v38 = vsel %vm502_vm12, %v3436_v16, %v3440_v18  ;;  %v871_v16 = vsel %vm502_vm12, %v3446_v20, %v3452_v24  ;;  %v869_v7 = vsel %vm502_vm12, %v3388_v3, %v3460_v28  ;;  %v4597_v1 = vld [vmem:[#allocation14_spill] sm:$0xff] }
 0x497   : > { %v1676_v14 = vmax.f32 %v1668_v51, 0.0  ;;  %v1669_v8 = vadd.f32 %v3382_v2, %v1641_v40  ;;  %v1642_v33 = vmul.f32 %v3358_v43, %v1608_v10  ;;  %v1610_v34 = vadd.f32 %v1609_v44, %v3334_v48  ;;  %1692 = vrot.lane.b32.xlu1 %v1675_v0, %s4587_s20  ;;  %2465 = vmatprep.subr.msk.mxu1 %vm2887_vm7, %v917_v12  ;;  %v1105_v62 = vpop.permute.xlu0 %1104  ;;  %v4595_v0 = vld [vmem:[#allocation21_spill] sm:$0xff]  ;;  %v4598_v12 = vld [vmem:[#allocation24_spill] sm:$0xff]  ;;  %v4599_v44 = vld [vmem:[#allocation15_spill] sm:$0xff] }
 0x498   : > { %2466 = vmatpush1.msk.msra.mxu1 %vm2894_vm8, %v916_v11  ;;  %v1613_v19 = vpop.f32.mrf.mxu0  ;;  %v1111_v5 = vsel %vm567_vm13, %v3466_v25, %v3484_v32  ;;  %v4593_v32 = vld [vmem:[#allocation16_spill] sm:$0xff]  ;;  %v4596_v51 = vld [vmem:[#allocation13_spill] sm:$0xff]  ;;  %v1189_v13 = vsel %vm589_vm5, %v4599_v44, %v4598_v12  ;;  %v4629_v12 = vld [vmem:[#allocation46_spill] sm:$0xff] }
 0x499   : > { %v1677_v35 = vmax.f32 %v1669_v8, 0.0  ;;  %v1670_v2 = vadd.f32 %v3374_v63, %v1642_v33  ;;  %v1643_v39 = vmul.f32 %v3358_v43, %v1610_v34  ;;  %v1614_v48 = vadd.f32 %v1613_v19, %v3336_v36  ;;  %1694 = vrot.lane.b32.xlu0 %v1676_v14, %s4587_s20  ;;  %2467 = vmatprep.subr.msk.mxu1 %vm2871_vm3, %v875_v15  ;;  %v4600_v14 = vld [vmem:[#allocation17_spill] sm:$0xff]  ;;  %v4602_v15 = vld [vmem:[#allocation26_spill] sm:$0xff] }
 0x49a   : > { %2468 = vmatpush1.msk.msra.mxu1 %vm2878_vm4, %v874_v29  ;;  %v1615_v47 = vpop.f32.mrf.mxu0  ;;  %v1191_v40 = vsel %vm589_vm5, %v4596_v51, %v4595_v0  ;;  %v1190_v10 = vsel %vm589_vm5, %v4597_v1, %v4596_v51  ;;  %v1188_v8 = vsel %vm589_vm5, %v4600_v14, %v4599_v44  ;;  %v4601_v29 = vld [vmem:[#allocation18_spill] sm:$0xff]  ;;  %v4625_v0 = vld [vmem:[#allocation44_spill] sm:$0xff]  ;;  %v4626_v51 = vld [vmem:[#allocation47_spill] sm:$0xff] }
 0x49b   : > { %v1678_v43 = vmax.f32 %v1670_v2, 0.0  ;;  %v1671_v49 = vadd.f32 %v3374_v63, %v1643_v39  ;;  %v1644_v52 = vmul.f32 %v3349_v42, %v1614_v48  ;;  %v1616_v55 = vadd.f32 %v1615_v47, %v3336_v36  ;;  %1696 = vrot.lane.b32.xlu1 %v1677_v35, %s4587_s20  ;;  %2469 = vmatprep.subr.msk.mxu1 %vm2871_vm3, %v873_v38  ;;  %v4603_v35 = vld [vmem:[#allocation20_spill] sm:$0xff]  ;;  %v4604_v39 = vld [vmem:[#allocation22_spill] sm:$0xff]  ;;  %v4606_v38 = vld [vmem:[#allocation23_spill] sm:$0xff] }
 0x49c   : > { %2470 = vmatpush1.msk.msra.mxu1 %vm2878_vm4, %v872_v17  ;;  %v870_v63 = vsel %vm502_vm12, %v3450_v23, %v3446_v20  ;;  %v868_v20 = vsel %vm502_vm12, %v3390_v4, %v3388_v3  ;;  %v1107_v23 = vpop.permute.xlu1 %1106  ;;  %v1114_v3 = vsel %vm567_vm13, %v3456_v26, %v1105_v62  ;;  %v1112_v4 = vsel %vm567_vm13, %v3476_v30, %v3468_v27  ;;  %v4589_v30 = vld [vmem:[#allocation8_spill] sm:$0xff]  ;;  %v4605_v17 = vld [vmem:[#allocation29_spill] sm:$0xff] }
 0x49d   : > { %v1679_v18 = vmax.f32 %v1671_v49, 0.0  ;;  %v1672_v36 = vadd.f32 %v3356_v57, %v1644_v52  ;;  %v1645_v37 = vmul.f32 %v3349_v42, %v1616_v55  ;;  %1698 = vrot.lane.b32.xlu0 %v1678_v43, %s4587_s20  ;;  %2471 = vmatprep.subr.msk.mxu1 %vm2871_vm3, %v871_v16  ;;  %v1115_v28 = vsel %vm567_vm13, %v1105_v62, %v1107_v23  ;;  %v4607_v43 = vld [vmem:[#allocation25_spill] sm:$0xff]  ;;  %v4608_v55 = vld [vmem:[#allocation31_spill] sm:$0xff]  ;;  %v4612_v23 = vld [vmem:[#allocation34_spill] sm:$0xff] }
 0x49e   : > { %2472 = vmatpush1.msk.msra.mxu1 %vm2878_vm4, %v870_v63  ;;  %v1110_v26 = vsel %vm567_vm13, %v3472_v50, %v3466_v25  ;;  %v1185_v25 = vpop.permute.xlu0 %1184  ;;  %v4588_v50 = vld [vmem:[#allocation7_spill] sm:$0xff]  ;;  %v1017_v2 = vsel %vm541_vm6, %v4603_v35, %v4602_v15  ;;  %v1016_v48 = vsel %vm541_vm6, %v4604_v39, %v4603_v35  ;;  %v1015_v47 = vsel %vm541_vm6, %v4606_v38, %v4605_v17  ;;  %v4627_v1 = vld [vmem:[#allocation49_spill] sm:$0xff] }
 0x49f   : > { %v1680_v24 = vmax.f32 %v1672_v36, 0.0  ;;  %v1673_v42 = vadd.f32 %v3356_v57, %v1645_v37  ;;  %1700 = vrot.lane.b32.xlu1 %v1679_v18, %s4587_s20  ;;  %2473 = vmatprep.subr.msk.mxu1 %vm2871_vm3, %v869_v7  ;;  %v1113_v57 = vsel %vm567_vm13, %v3468_v27, %v3462_v21  ;;  %v1109_v21 = vsel %vm567_vm13, %v3492_v9, %v3478_v31  ;;  %v4609_v16 = vld [vmem:[#allocation27_spill] sm:$0xff]  ;;  %v4610_v18 = vld [vmem:[#allocation28_spill] sm:$0xff]  ;;  %v4611_v7 = vld [vmem:[#allocation30_spill] sm:$0xff] }
 0x4a0   : > { %2474 = vmatpush1.msk.msra.mxu1 %vm2878_vm4, %v868_v20  ;;  %v1108_v27 = vsel %vm567_vm13, %v3498_v45, %v3492_v9  ;;  %v4594_v45 = vld [vmem:[#allocation19_spill] sm:$0xff]  ;;  %v1014_v49 = vsel %vm541_vm6, %v4607_v43, %v4606_v38  ;;  %v1013_v63 = vsel %vm541_vm6, %v4609_v16, %v4608_v55  ;;  %v1012_v62 = vsel %vm541_vm6, %v4610_v18, %v4609_v16 }
 0x4a1   : > { %v1681_v22 = vmax.f32 %v1673_v42, 0.0  ;;  %1702 = vrot.lane.b32.xlu0 %v1680_v24, %s4587_s20  ;;  %1243 = vmatprep.subr.mxu1 %v1115_v28  ;;  %v1192_v6 = vsel %vm589_vm5, %v4594_v45, %v4593_v32  ;;  %v4613_v24 = vld [vmem:[#allocation32_spill] sm:$0xff]  ;;  %v4614_v28 = vld [vmem:[#allocation33_spill] sm:$0xff]  ;;  %v4634_v35 = vmov 0.0  }
 0x4a2   : > { %1244 = vmatpush1.msra.mxu1 %v1114_v3  ;;  %v1009_v11 = vpop.permute.xlu0 %1008  ;;  %v969_v42 = vsel %vm528_vm9, %v4613_v24, %v4612_v23  ;;  %v4615_v3 = vld [vmem:[#allocation36_spill] sm:$0xff]  ;;  %v4624_v45 = vld [vmem:[#allocation45_spill] sm:$0xff] }
 0x4a3   : > { %1704 = vrot.lane.b32.xlu1 %v1681_v22, %s4587_s20  ;;  %1245 = vmatprep.subr.mxu1 %v1113_v57  ;;  %v1018_v19 = vsel %vm541_vm6, %v4601_v29, %v1009_v11  ;;  %v968_v22 = vsel %vm528_vm9, %v4614_v28, %v4613_v24  ;;  %v4616_v57 = vld [vmem:[#allocation35_spill] sm:$0xff]  ;;  %v4633_v29 = vld [vmem:[#allocation10_spill] sm:$0xff]  ;;  %s373_s20 = scalar_lea.vmem %s4489_s8, %s2755_s21 }
 0x4a4   : > { %1246 = vmatpush1.msra.mxu1 %v1112_v4  ;;  %v967_v4 = vsel %vm528_vm9, %v4616_v57, %v4615_v3 }
 0x4a5   : > { %1247 = vmatprep.subr.mxu1 %v1111_v5  ;;  %v4617_v5 = vld [vmem:[#allocation37_spill] sm:$0xff] }
 0x4a6   : > { %1248 = vmatpush1.msra.mxu1 %v1110_v26  ;;  %v961_v52 = vpop.permute.xlu0 %960  ;;  %v966_v26 = vsel %vm528_vm9, %v4617_v5, %v4616_v57 }
 0x4a7   : > { %1249 = vmatprep.subr.mxu1 %v1109_v21  ;;  %v970_v20 = vsel %vm528_vm9, %v4611_v7, %v961_v52 }
 0x4a8   : > { %1250 = vmatpush1.msra.mxu1 %v1108_v27  ;;  %v4618_v27 = vld [vmem:[#allocation39_spill] sm:$0xff] }
 0x4a9   : > { %2475 = vmatprep.subr.msk.mxu1 %vm2887_vm7, %v3038_v61  ;;  %v1187_v61 = vpop.permute.xlu1 %1186 }
 0x4aa   : > { %2476 = vmatpush1.msk.msra.mxu1 %vm2894_vm8, %v3031_v60  ;;  %v4590_v60 = vld [vmem:[#allocation6_spill] sm:$0xff]  ;;  %v1145_v21 = vpop.permute.xlu0 %1144 }
 0x4ab   : > { %2477 = vmatprep.subr.msk.mxu1 %vm2887_vm7, %v3028_v59  ;;  %v4591_v59 = vld [vmem:[#allocation11_spill] sm:$0xff] }
 0x4ac   : > { %2478 = vmatpush1.msk.msra.mxu1 %vm2894_vm8, %v3018_v56  ;;  %v1195_v56 = vsel %vm589_vm5, %v1185_v25, %v1187_v61  ;;  %v1194_v31 = vsel %vm589_vm5, %v4591_v59, %v1185_v25  ;;  %v4619_v25 = vld [vmem:[#allocation38_spill] sm:$0xff]  ;;  %v4620_v61 = vld [vmem:[#allocation40_spill] sm:$0xff] }
 0x4ad   : > { %2479 = vmatprep.subr.msk.mxu1 %vm2887_vm7, %v3008_v53  ;;  %v4592_v53 = vld [vmem:[#allocation12_spill] sm:$0xff]  ;;  %v1011_v33 = vpop.permute.xlu1 %1010  ;;  %v4621_v59 = vld [vmem:[#allocation42_spill] sm:$0xff] }
 0x4ae   : > { %2480 = vmatpush1.msk.msra.mxu1 %vm2894_vm8, %v4588_v50  ;;  %v1193_v9 = vsel %vm589_vm5, %v4593_v32, %v4592_v53  ;;  %v1019_v34 = vsel %vm541_vm6, %v1009_v11, %v1011_v33  ;;  %v965_v50 = vsel %vm528_vm9, %v4619_v25, %v4618_v27  ;;  %v4622_v53 = vld [vmem:[#allocation41_spill] sm:$0xff]  ;;  %v4623_v32 = vld [vmem:[#allocation43_spill] sm:$0xff]  ;;  %v4628_v11 = vld [vmem:[#allocation52_spill] sm:$0xff] }
 0x4af   : > { %2481 = vmatprep.subr.msk.mxu1 %vm2887_vm7, %v4589_v30  ;;  %v964_v30 = vsel %vm528_vm9, %v4620_v61, %v4619_v25  ;;  %v1149_v44 = vsel %vm578_vm10, %v4629_v12, %v4628_v11 }
 0x4b0   : > { %2482 = vmatpush1.msk.msra.mxu1 %vm2894_vm8, %v4590_v60 }
 0x4b1   : > { %1259 = vmatprep.subr.mxu1 %v1195_v56  ;;  %v963_v36 = vpop.permute.xlu1 %962 }
 0x4b2   : > { %1260 = vmatpush2.msra.mxu1 %v1194_v31  ;;  %v971_v37 = vsel %vm528_vm9, %v961_v52, %v963_v36  ;;  %v1154_v31 = vsel %vm578_vm10, %v4621_v59, %v1145_v21 }
 0x4b3   : > { %1261 = vmatprep.subr.mxu1 %v1193_v9  ;;  %v1153_v9 = vsel %vm578_vm10, %v4623_v32, %v4622_v53 }
 0x4b4   : > { %1262 = vmatpush2.msra.mxu1 %v1192_v6  ;;  %v1152_v6 = vsel %vm578_vm10, %v4624_v45, %v4623_v32 }
 0x4b5   : > { %1263 = vmatprep.subr.mxu1 %v1191_v40  ;;  %v1147_v60 = vpop.permute.xlu1 %1146  ;;  %v1151_v40 = vsel %vm578_vm10, %v4626_v51, %v4625_v0 }
 0x4b6   : > { %1264 = vmatpush2.msra.mxu1 %v1190_v10  ;;  %v1155_v56 = vsel %vm578_vm10, %v1145_v21, %v1147_v60  ;;  %v1150_v10 = vsel %vm578_vm10, %v4627_v1, %v4626_v51 }
 0x4b7   : > { %1265 = vmatprep.subr.mxu1 %v1189_v13  ;;  %v4630_v13 = vld [vmem:[#allocation50_spill] sm:$0xff] }
 0x4b8   : > { %1266 = vmatpush2.msra.mxu1 %v1188_v8  ;;  %v1148_v14 = vsel %vm578_vm10, %v4630_v13, %v4629_v12  ;;  %v4631_v8 = vld [vmem:[#allocation9_spill] sm:$0xff] }
 0x4b9   : > { %2483 = vmatprep.subr.msk.mxu1 %vm2887_vm7, %v1019_v34  ;;  %v1216_v33 = vsub.s32 1, %v4631_v8  ;;  %v3845_v34 = vsub.s32 0, %v4631_v8 }
 0x4ba   : > { %2484 = vmatpush2.msk.msra.mxu1 %vm2894_vm8, %v1018_v19 }
 0x4bb   : > { %2485 = vmatprep.subr.msk.mxu1 %vm2887_vm7, %v1017_v2  ;;  %4632 = vst [vmem:[#allocation7_spill] sm:$0xff] %v3845_v34  ;;  %v1217_v19 = vrot.slane %v4633_v29, %v1216_v33  ;;  %v1213_v15 = vrot.slane %v4633_v29, %v3845_v34 }
 0x4bc   : > { %2486 = vmatpush2.msk.msra.mxu1 %vm2894_vm8, %v1016_v48 }
 0x4bd   : > { %2487 = vmatprep.subr.msk.mxu1 %vm2887_vm7, %v1015_v47  ;;  %1291 = vmatprep.mubr.f32.mxu1 %v1217_v19 }
 0x4be   : > { %2488 = vmatpush2.msk.msra.mxu1 %vm2894_vm8, %v1014_v49 }
 0x4bf   : > { %2489 = vmatprep.subr.msk.mxu1 %vm2887_vm7, %v1013_v63 }
 0x4c0   : > { %2490 = vmatpush2.msk.msra.mxu1 %vm2894_vm8, %v1012_v62 }
 0x4c1   : > { %2491 = vmatprep.subr.msk.mxu1 %vm2871_vm3, %v971_v37 }
 0x4c2   : > { %2492 = vmatpush2.msk.msra.mxu1 %vm2878_vm4, %v970_v20 }
 0x4c3   : > { %2493 = vmatprep.subr.msk.mxu1 %vm2871_vm3, %v969_v42 }
 0x4c4   : > { %2494 = vmatpush2.msk.msra.mxu1 %vm2878_vm4, %v968_v22 }
 0x4c5   : > { %2495 = vmatprep.subr.msk.mxu1 %vm2871_vm3, %v967_v4 }
 0x4c6   : > { %2496 = vmatpush2.msk.msra.mxu1 %vm2878_vm4, %v966_v26 }
 0x4c7   : > { %2497 = vmatprep.subr.msk.mxu1 %vm2871_vm3, %v965_v50 }
 0x4c8   : > { %2498 = vmatpush2.msk.msra.mxu1 %vm2878_vm4, %v964_v30 }
 0x4c9   : > { %1283 = vmatprep.subr.mxu1 %v1155_v56 }
 0x4ca   : > { %1284 = vmatpush2.msra.mxu1 %v1154_v31 }
 0x4cb   : > { %1285 = vmatprep.subr.mxu1 %v1153_v9 }
 0x4cc   : > { %1286 = vmatpush2.msra.mxu1 %v1152_v6 }
 0x4cd   : > { %1287 = vmatprep.subr.mxu1 %v1151_v40 }
 0x4ce   : > { %1288 = vmatpush2.msra.mxu1 %v1150_v10 }
 0x4cf   : > { %1289 = vmatprep.subr.mxu1 %v1149_v44 }
 0x4d0   : > { %1290 = vmatpush2.msra.mxu1 %v1148_v14 }
 0x4d1   : > { %1292 = vmatmul.mubr.f32.vlgmr.msra.gmra.mxu1 %v1213_v15  ;;  %v392_v15 = vld [vmem:[%s4484_s3 + $0x70] sm:$0xff] }
 0x4d2   : > { %2252 = vmatprep.mubr.f32.mxu1 %v4634_v35 }
 0x507   : > { %v1691_v2 = vpop.permute.xlu0 %1690 }
 0x508   : > { %v3852_v39 = vsel %vm477_vm1, 0.0, %v1691_v2 }
 0x509   : > { %v1693_v48 = vpop.permute.xlu1 %1692  ;;  %1794 = vrot.lane.b32.xlu1 %v3852_v39, %s2661_s15 }
 0x50a   : > { %v3857_v17 = vsel %vm477_vm1, %v1691_v2, %v1693_v48  ;;  %v3872_v38 = vsel %vm477_vm1, %v1693_v48, 0.0 }
 0x50b   : > { %1796 = vrot.lane.b32.xlu0 %v3857_v17, %s2661_s15  ;;  %v1695_v47 = vpop.permute.xlu0 %1694 }
 0x50c   : > { %v3887_v43 = vsel %vm477_vm1, 0.0, %v1695_v47 }
 0x50d   : > { %1746 = vrot.lane.b32.xlu1 %v3852_v39, %s4541_s25  ;;  %v1697_v49 = vpop.permute.xlu1 %1696 }
 0x50e   : > { %v3902_v52 = vsel %vm477_vm1, %v1695_v47, %v1697_v49  ;;  %v1727_v16 = vsel %vm477_vm1, %v1697_v49, 0.0 }
 0x50f   : > { %1748 = vrot.lane.b32.xlu0 %v3857_v17, %s4541_s25  ;;  %v1699_v63 = vpop.permute.xlu0 %1698 }
 0x510   : > { %v3947_v37 = vsel %vm477_vm1, 0.0, %v1699_v63 }
 0x511   : > { %1986 = vrot.lane.b32.xlu1 %v3852_v39, %s4542_s26  ;;  %v1701_v55 = vpop.permute.xlu1 %1700 }
 0x512   : > { %v3929_v18 = vsel %vm477_vm1, %v1699_v63, %v1701_v55  ;;  %v1728_v62 = vsel %vm477_vm1, %v1701_v55, 0.0 }
 0x513   : > { %1988 = vrot.lane.b32.xlu0 %v3857_v17, %s4542_s26  ;;  %v1703_v36 = vpop.permute.xlu0 %1702 }
 0x514   : > { %v3952_v7 = vsel %vm477_vm1, 0.0, %v1703_v36 }
 0x515   : > { %2066 = vrot.lane.b32.xlu1 %v3852_v39, %s2657_s11  ;;  %v1705_v20 = vpop.permute.xlu1 %1704 }
 0x516   : > { %v3971_v23 = vsel %vm477_vm1, %v1703_v36, %v1705_v20  ;;  %v4031_v56 = vsel %vm477_vm1, %v1705_v20, 0.0 }
 0x517   : > { %2070 = vrot.lane.b32.xlu0 %v3872_v38, %s2657_s11 }
 0x519   : > { %1890 = vrot.lane.b32.xlu1 %v3852_v39, %s2658_s12 }
 0x51b   : > { %1894 = vrot.lane.b32.xlu0 %v3872_v38, %s2658_s12 }
 0x51d   : > { %1842 = vrot.lane.b32.xlu1 %v3852_v39, %s2659_s13 }
 0x51f   : > { %1846 = vrot.lane.b32.xlu0 %v3872_v38, %s2659_s13 }
 0x521   : > { %1798 = vrot.lane.b32.xlu1 %v3872_v38, %s2661_s15 }
 0x523   : > { %2072 = vrot.lane.b32.xlu0 %v3887_v43, %s2657_s11 }
 0x525   : > { %1750 = vrot.lane.b32.xlu1 %v3872_v38, %s4541_s25 }
 0x527   : > { %1896 = vrot.lane.b32.xlu0 %v3887_v43, %s2658_s12 }
 0x529   : > { %1990 = vrot.lane.b32.xlu1 %v3872_v38, %s4542_s26 }
 0x52b   : > { %1848 = vrot.lane.b32.xlu0 %v3887_v43, %s2659_s13 }
 0x52d   : > { %2068 = vrot.lane.b32.xlu1 %v3857_v17, %s2657_s11 }
 0x52f   : > { %1802 = vrot.lane.b32.xlu0 %v3902_v52, %s2661_s15 }
 0x531   : > { %1892 = vrot.lane.b32.xlu1 %v3857_v17, %s2658_s12 }
 0x533   : > { %1754 = vrot.lane.b32.xlu0 %v3902_v52, %s4541_s25 }
 0x535   : > { %1844 = vrot.lane.b32.xlu1 %v3857_v17, %s2659_s13 }
 0x537   : > { %1994 = vrot.lane.b32.xlu0 %v3902_v52, %s4542_s26 }
 0x539   : > { %1800 = vrot.lane.b32.xlu1 %v3887_v43, %s2661_s15 }
 0x53b   : > { %2074 = vrot.lane.b32.xlu0 %v3902_v52, %s2657_s11 }
 0x53d   : > { %1752 = vrot.lane.b32.xlu1 %v3887_v43, %s4541_s25 }
 0x53f   : > { %1898 = vrot.lane.b32.xlu0 %v3902_v52, %s2658_s12 }
 0x541   : > { %1992 = vrot.lane.b32.xlu1 %v3887_v43, %s4542_s26 }
 0x543   : > { %1850 = vrot.lane.b32.xlu0 %v3902_v52, %s2659_s13 }
 0x545   : > { %1804 = vrot.lane.b32.xlu1 %v1727_v16, %s2661_s15 }
 0x547   : > { %1808 = vrot.lane.b32.xlu0 %v3929_v18, %s2661_s15 }
 0x549   : > { %1756 = vrot.lane.b32.xlu1 %v1727_v16, %s4541_s25 }
 0x54b   : > { %1760 = vrot.lane.b32.xlu0 %v3929_v18, %s4541_s25 }
 0x54d   : > { %1996 = vrot.lane.b32.xlu1 %v1727_v16, %s4542_s26 }
 0x54f   : > { %2000 = vrot.lane.b32.xlu0 %v3929_v18, %s4542_s26 }
 0x551   : > { %2076 = vrot.lane.b32.xlu1 %v1727_v16, %s2657_s11 }
 0x553   : > { %2082 = vrot.lane.b32.xlu0 %v1728_v62, %s2657_s11 }
 0x555   : > { %1900 = vrot.lane.b32.xlu1 %v1727_v16, %s2658_s12 }
 0x557   : > { %1906 = vrot.lane.b32.xlu0 %v1728_v62, %s2658_s12 }
 0x559   : > { %1852 = vrot.lane.b32.xlu1 %v1727_v16, %s2659_s13 }
 0x55b   : > { %1858 = vrot.lane.b32.xlu0 %v1728_v62, %s2659_s13 }
 0x55d   : > { %1806 = vrot.lane.b32.xlu1 %v3947_v37, %s2661_s15 }
 0x55f   : > { %2084 = vrot.lane.b32.xlu0 %v3952_v7, %s2657_s11 }
 0x561   : > { %1758 = vrot.lane.b32.xlu1 %v3947_v37, %s4541_s25 }
 0x563   : > { %1908 = vrot.lane.b32.xlu0 %v3952_v7, %s2658_s12 }
 0x565   : > { %1998 = vrot.lane.b32.xlu1 %v3947_v37, %s4542_s26 }
 0x567   : > { %1860 = vrot.lane.b32.xlu0 %v3952_v7, %s2659_s13 }
 0x569   : > { %2078 = vrot.lane.b32.xlu1 %v3947_v37, %s2657_s11 }
 0x56b   : > { %2044 = vrot.lane.b32.xlu0 %v3952_v7, %s2660_s14 }
 0x56d   : > { %1902 = vrot.lane.b32.xlu1 %v3947_v37, %s2658_s12 }
 0x56f   : > { %1814 = vrot.lane.b32.xlu0 %v3971_v23, %s2661_s15 }
 0x571   : > { %1854 = vrot.lane.b32.xlu1 %v3947_v37, %s2659_s13 }
 0x573   : > { %2042 = vrot.lane.b32.xlu0 %v1728_v62, %s2660_s14 }
 0x575   : > { %1810 = vrot.lane.b32.xlu1 %v1728_v62, %s2661_s15 }
 0x577   : > { %1766 = vrot.lane.b32.xlu0 %v3971_v23, %s4541_s25 }
 0x579   : > { %1762 = vrot.lane.b32.xlu1 %v1728_v62, %s4541_s25 }
 0x57b   : > { %v3982_v24 = vpop.permute.xlu1 %1794  ;;  %2038 = vrot.lane.b32.xlu0 %v3947_v37, %s2660_s14 }
 0x57d   : > { %2002 = vrot.lane.b32.xlu1 %v1728_v62, %s4542_s26  ;;  %v3987_v42 = vpop.permute.xlu0 %1796 }
 0x57f   : > { %v3989_v28 = vpop.permute.xlu1 %1746  ;;  %2006 = vrot.lane.b32.xlu0 %v3971_v23, %s4542_s26 }
 0x581   : > { %2080 = vrot.lane.b32.xlu1 %v3929_v18, %s2657_s11  ;;  %v3995_v22 = vpop.permute.xlu0 %1748 }
 0x583   : > { %v3997_v3 = vpop.permute.xlu1 %1986  ;;  %1954 = vrot.lane.b32.xlu0 %v1728_v62, %s4635_s22 }
 0x585   : > { %1904 = vrot.lane.b32.xlu1 %v3929_v18, %s2658_s12  ;;  %v4002_v57 = vpop.permute.xlu0 %1988 }
 0x587   : > { %v4004_v4 = vpop.permute.xlu1 %2066  ;;  %2036 = vrot.lane.b32.xlu0 %v1727_v16, %s2660_s14 }
 0x589   : > { %1856 = vrot.lane.b32.xlu1 %v3929_v18, %s2659_s13  ;;  %v2071_v5 = vpop.permute.xlu0 %2070 }
 0x58b   : > { %v4009_v26 = vpop.permute.xlu1 %1890  ;;  %2032 = vrot.lane.b32.xlu0 %v3887_v43, %s2660_s14 }
 0x58c   : > { %4636 = vst [vmem:[#allocation8_spill] sm:$0xff] %v4009_v26 }
 0x58d   : > { %1812 = vrot.lane.b32.xlu1 %v3952_v7, %s2661_s15  ;;  %v1895_v21 = vpop.permute.xlu0 %1894 }
 0x58f   : > { %v4015_v27 = vpop.permute.xlu1 %1842  ;;  %2086 = vrot.lane.b32.xlu0 %v3971_v23, %s2657_s11 }
 0x590   : > { %4637 = vst [vmem:[#allocation6_spill] sm:$0xff] %v4015_v27 }
 0x591   : > { %1764 = vrot.lane.b32.xlu1 %v3952_v7, %s4541_s25  ;;  %v1847_v25 = vpop.permute.xlu0 %1846 }
 0x593   : > { %v1799_v50 = vpop.permute.xlu1 %1798  ;;  %1948 = vrot.lane.b32.xlu0 %v1727_v16, %s4635_s22 }
 0x594   : > { %v4024_v61 = vsel %vm515_vm11, %v3987_v42, %v1799_v50 }
 0x595   : > { %2004 = vrot.lane.b32.xlu1 %v3952_v7, %s4542_s26  ;;  %v2073_v30 = vpop.permute.xlu0 %2072 }
 0x597   : > { %v1751_v60 = vpop.permute.xlu1 %1750  ;;  %1910 = vrot.lane.b32.xlu0 %v3971_v23, %s2658_s12 }
 0x598   : > { %v4035_v59 = vsel %vm502_vm12, %v3995_v22, %v1751_v60 }
 0x599   : > { %1816 = vrot.lane.b32.xlu1 %v4031_v56, %s2661_s15  ;;  %v1897_v31 = vpop.permute.xlu0 %1896 }
 0x59b   : > { %v1991_v53 = vpop.permute.xlu1 %1990  ;;  %2030 = vrot.lane.b32.xlu0 %v3872_v38, %s2660_s14 }
 0x59c   : > { %v4043_v32 = vsel %vm567_vm13, %v4002_v57, %v1991_v53 }
 0x59d   : > { %2040 = vrot.lane.b32.xlu1 %v3929_v18, %s2660_s14  ;;  %v1849_v9 = vpop.permute.xlu0 %1848 }
 0x59f   : > { %v4047_v45 = vpop.permute.xlu1 %2068  ;;  %1862 = vrot.lane.b32.xlu0 %v3971_v23, %s2659_s13 }
 0x5a0   : > { %v4053_v6 = vsel %vm589_vm5, %v4047_v45, %v2071_v5 }
 0x5a1   : > { %1768 = vrot.lane.b32.xlu1 %v4031_v56, %s4541_s25  ;;  %v1803_v0 = vpop.permute.xlu0 %1802 }
 0x5a3   : > { %v4057_v51 = vpop.permute.xlu1 %1892  ;;  %2046 = vrot.lane.b32.xlu0 %v3971_v23, %s2660_s14 }
 0x5a4   : > { %4638 = vst [vmem:[#allocation11_spill] sm:$0xff] %v4057_v51  ;;  %v4063_v40 = vsel %vm541_vm6, %v4057_v51, %v1895_v21 }
 0x5a5   : > { %4639 = vst [vmem:[#allocation12_spill] sm:$0xff] %v4063_v40  ;;  %1956 = vrot.lane.b32.xlu1 %v3952_v7, %s4635_s22  ;;  %v1755_v1 = vpop.permute.xlu0 %1754 }
 0x5a7   : > { %v4067_v10 = vpop.permute.xlu1 %1844  ;;  %1960 = vrot.lane.b32.xlu0 %v4031_v56, %s4635_s22 }
 0x5a8   : > { %4640 = vst [vmem:[#allocation16_spill] sm:$0xff] %v4067_v10  ;;  %v4073_v11 = vsel %vm528_vm9, %v4067_v10, %v1847_v25 }
 0x5a9   : > { %4641 = vst [vmem:[#allocation19_spill] sm:$0xff] %v4073_v11  ;;  %2008 = vrot.lane.b32.xlu1 %v4031_v56, %s4542_s26  ;;  %v1995_v12 = vpop.permute.xlu0 %1994 }
 0x5ab   : > { %v1801_v44 = vpop.permute.xlu1 %1800  ;;  %2026 = vrot.lane.b32.xlu0 %v3852_v39, %s2660_s14 }
 0x5ac   : > { %v4080_v13 = vsel %vm515_vm11, %v1801_v44, %v1803_v0 }
 0x5ad   : > { %1952 = vrot.lane.b32.xlu1 %v3929_v18, %s4635_s22  ;;  %v2075_v14 = vpop.permute.xlu0 %2074 }
 0x5ae   : > { %v4085_v33 = vsel %vm589_vm5, %v2073_v30, %v2075_v14 }
 0x5af   : > { %v1753_v29 = vpop.permute.xlu1 %1752  ;;  %1942 = vrot.lane.b32.xlu0 %v3872_v38, %s4635_s22 }
 0x5b0   : > { %v4090_v19 = vsel %vm502_vm12, %v1753_v29, %v1755_v1 }
 0x5b1   : > { %2034 = vrot.lane.b32.xlu1 %v3902_v52, %s2660_s14  ;;  %v1899_v35 = vpop.permute.xlu0 %1898 }
 0x5b2   : > { %v4098_v2 = vsel %vm541_vm6, %v1897_v31, %v1899_v35 }
 0x5b3   : > { %4642 = vst [vmem:[#allocation21_spill] sm:$0xff] %v4098_v2  ;;  %v1993_v48 = vpop.permute.xlu1 %1992  ;;  %1206 = vperm.xlu0 %2612, %v392_v15  }
 0x5b4   : > { %v4101_v47 = vsel %vm567_vm13, %v1993_v48, %v1995_v12 }
 0x5b5   : > { %1950 = vrot.lane.b32.xlu1 %v3947_v37, %s4635_s22  ;;  %v1851_v38 = vpop.permute.xlu0 %1850 }
 0x5b6   : > { %v4106_v49 = vsel %vm528_vm9, %v1849_v9, %v1851_v38 }
 0x5b7   : > { %4643 = vst [vmem:[#allocation13_spill] sm:$0xff] %v4106_v49  ;;  %v1805_v55 = vpop.permute.xlu1 %1804 }
 0x5b8   : > { %v4109_v16 = vsel %vm515_vm11, %v1803_v0, %v1805_v55 }
 0x5b9   : > { %2088 = vrot.lane.b32.xlu1 %v4031_v56, %s2657_s11  ;;  %v4113_v63 = vpop.permute.xlu0 %1808 }
 0x5bb   : > { %v1757_v62 = vpop.permute.xlu1 %1756 }
 0x5bc   : > { %v4116_v36 = vsel %vm502_vm12, %v1755_v1, %v1757_v62  ;;  %v4146_v1 = vld [vmem:[%s4488_s7] sm:$0xff] }
 0x5bd   : > { %1946 = vrot.lane.b32.xlu1 %v3902_v52, %s4635_s22  ;;  %v4120_v20 = vpop.permute.xlu0 %1760  ;;  %4645 = vst [vmem:[#allocation24_spill] sm:$0xff] %v4146_v1  ;;  %v2113_v44 = vcombine.high %v4146_v1, %v4146_v1 }
 0x5bf   : > { %v1997_v5 = vpop.permute.xlu1 %1996  ;;  %2181 = vmatprep.mubr.f32.mxu0 %v2113_v44 }
 0x5c0   : > { %v4123_v21 = vsel %vm567_vm13, %v1995_v12, %v1997_v5 }
 0x5c1   : > { %1912 = vrot.lane.b32.xlu1 %v4031_v56, %s2658_s12  ;;  %v4127_v25 = vpop.permute.xlu0 %2000 }
 0x5c3   : > { %v2077_v50 = vpop.permute.xlu1 %2076 }
 0x5c4   : > { %v4130_v30 = vsel %vm589_vm5, %v2075_v14, %v2077_v50 }
 0x5c5   : > { %2028 = vrot.lane.b32.xlu1 %v3857_v17, %s2660_s14  ;;  %v4134_v60 = vpop.permute.xlu0 %2082 }
 0x5c7   : > { %v1901_v31 = vpop.permute.xlu1 %1900 }
 0x5c8   : > { %v4137_v53 = vsel %vm541_vm6, %v1899_v35, %v1901_v31  ;;  %v407_v31 = vld [vmem:[%s4484_s3 + $0xe8] sm:$0xff] }
 0x5c9   : > { %4644 = vst [vmem:[#allocation14_spill] sm:$0xff] %v4137_v53  ;;  %1864 = vrot.lane.b32.xlu1 %v4031_v56, %s2659_s13  ;;  %v4141_v9 = vpop.permute.xlu0 %1906 }
 0x5cb   : > { %v1853_v0 = vpop.permute.xlu1 %1852 }
 0x5cc   : > { %v4149_v12 = vsel %vm528_vm9, %v1851_v38, %v1853_v0 }
 0x5cd   : > { %4646 = vst [vmem:[#allocation15_spill] sm:$0xff] %v4149_v12  ;;  %1944 = vrot.lane.b32.xlu1 %v3887_v43, %s4635_s22  ;;  %v1859_v14 = vpop.permute.xlu0 %1858 }
 0x5cf   : > { %v1807_v29 = vpop.permute.xlu1 %1806 }
 0x5d1   : > { %2048 = vrot.lane.b32.xlu1 %v4031_v56, %s2660_s14  ;;  %v4157_v15 = vpop.permute.xlu0 %2084 }
 0x5d3   : > { %v1759_v35 = vpop.permute.xlu1 %1758 }
 0x5d4   : > { %v1774_v48 = vsel %vm502_vm12, %v1759_v35, %v4120_v20  ;;  %v4667_v54 = vld [vmem:[#allocation15_spill] sm:$0xff] }
 0x5d5   : > { %1958 = vrot.lane.b32.xlu1 %v3971_v23, %s4635_s22  ;;  %v4163_v38 = vpop.permute.xlu0 %1908 }
 0x5d7   : > { %v1999_v55 = vpop.permute.xlu1 %1998 }
 0x5d8   : > { %v4167_v62 = vsel %vm567_vm13, %v1999_v55, %v4127_v25 }
 0x5d9   : > { %1940 = vrot.lane.b32.xlu1 %v3857_v17, %s4635_s22  ;;  %v4171_v56 = vpop.permute.xlu0 %1860 }
 0x5da   : > { %4647 = vst [vmem:[#allocation17_spill] sm:$0xff] %v4171_v56 }
 0x5db   : > { %v4173_v5 = vpop.permute.xlu1 %2078 }
 0x5dd   : > { %1938 = vrot.lane.b32.xlu1 %v3852_v39, %s4635_s22  ;;  %v4177_v50 = vpop.permute.xlu0 %2044 }
 0x5de   : > { %4648 = vst [vmem:[#allocation18_spill] sm:$0xff] %v4177_v50 }
 0x5df   : > { %v4182_v0 = vpop.permute.xlu1 %1902 }
 0x5e0   : > { %4649 = vst [vmem:[#allocation26_spill] sm:$0xff] %v4182_v0 }
 0x5e1   : > { %2108 = vperm.xlu1 %2613, %v407_v31   ;;  %v1815_v44 = vpop.permute.xlu0 %1814 }
 0x5e3   : > { %v1855_v35 = vpop.permute.xlu1 %1854 }
 0x5e5   : > { %v4184_v55 = vpop.permute.xlu0 %2042 }
 0x5e6   : > { %4650 = vst [vmem:[#allocation20_spill] sm:$0xff] %v4184_v55 }
 0x5e7   : > { %v1811_v34 = vpop.permute.xlu1 %1810 }
 0x5e9   : > { %v1767_v8 = vpop.permute.xlu0 %1766 }
 0x5eb   : > { %v1763_v1 = vpop.permute.xlu1 %1762 }
 0x5ed   : > { %v4186_v11 = vpop.permute.xlu0 %2038 }
 0x5ee   : > { %4651 = vst [vmem:[#allocation22_spill] sm:$0xff] %v4186_v11 }
 0x5ef   : > { %v2003_v27 = vpop.permute.xlu1 %2002 }
 0x5f1   : > { %v2007_v10 = vpop.permute.xlu0 %2006 }
 0x5f3   : > { %v4188_v49 = vpop.permute.xlu1 %2080 }
 0x5f5   : > { %v4190_v50 = vpop.permute.xlu0 %1954 }
 0x5f6   : > { %4652 = vst [vmem:[#allocation29_spill] sm:$0xff] %v4190_v50 }
 0x5f7   : > { %v4192_v12 = vpop.permute.xlu1 %1904 }
 0x5f8   : > { %4653 = vst [vmem:[#allocation23_spill] sm:$0xff] %v4192_v12 }
 0x5f9   : > { %v4194_v56 = vpop.permute.xlu0 %2036 }
 0x5fa   : > { %4654 = vst [vmem:[#allocation25_spill] sm:$0xff] %v4194_v56 }
 0x5fb   : > { %v1857_v31 = vpop.permute.xlu1 %1856 }
 0x5fc   : > { %v4197_v40 = vsel %vm528_vm9, %v1855_v35, %v1857_v31  ;;  %v4200_v55 = vsel %vm528_vm9, %v1857_v31, %v1859_v14  ;;  %v1823_v31 = vsel %vm515_vm11, %v4113_v63, %v1811_v34  ;;  %v1818_v34 = vsel %vm515_vm11, %v3982_v24, %v3987_v42 }
 0x5fd   : > { %v4202_v26 = vpop.permute.xlu0 %2032 }
 0x5fe   : > { %4655 = vst [vmem:[#allocation31_spill] sm:$0xff] %v4202_v26 }
 0x5ff   : > { %v1813_v11 = vpop.permute.xlu1 %1812 }
 0x600   : > { %v1824_v35 = vsel %vm515_vm11, %v1813_v11, %v1815_v44 }
 0x601   : > { %v4204_v51 = vpop.permute.xlu0 %2086 }
 0x603   : > { %v1765_v2 = vpop.permute.xlu1 %1764 }
 0x605   : > { %v4206_v53 = vpop.permute.xlu0 %1948 }
 0x606   : > { %4656 = vst [vmem:[#allocation27_spill] sm:$0xff] %v4206_v53  ;;  %v1822_v53 = vsel %vm515_vm11, %v1807_v29, %v4113_v63 }
 0x607   : > { %v2005_v50 = vpop.permute.xlu1 %2004 }
 0x609   : > { %v4208_v0 = vpop.permute.xlu0 %1910 }
 0x60b   : > { %v1817_v12 = vpop.permute.xlu1 %1816 }
 0x60c   : > { %v1825_v56 = vsel %vm515_vm11, %v1815_v44, %v1817_v12 }
 0x60d   : > { %2524 = vmatprep.subr.msk.mxu0 %vm2887_vm7, %v1825_v56  ;;  %v4214_v14 = vpop.permute.xlu0 %2030  ;;  %v4664_v56 = vld [vmem:[#allocation8_spill] sm:$0xff] }
 0x60e   : > { %2525 = vmatpush1.msk.msra.mxu0 %vm2894_vm8, %v1824_v35  ;;  %v4666_v35 = vld [vmem:[#allocation17_spill] sm:$0xff] }
 0x60f   : > { %v4222_v26 = vpop.permute.xlu1 %2040  ;;  %2526 = vmatprep.subr.msk.mxu0 %vm2887_vm7, %v1823_v31 }
 0x610   : > { %2527 = vmatpush1.msk.msra.mxu0 %vm2894_vm8, %v1822_v53 }
 0x611   : > { %2528 = vmatprep.subr.msk.mxu0 %vm2887_vm7, %v4109_v16  ;;  %v4231_v11 = vpop.permute.xlu0 %1862  ;;  %v1776_v16 = vsel %vm502_vm12, %v1765_v2, %v1767_v8 }
 0x612   : > { %2529 = vmatpush1.msk.msra.mxu0 %vm2894_vm8, %v4080_v13  ;;  %v1775_v13 = vsel %vm502_vm12, %v4120_v20, %v1763_v1  ;;  %v1872_v31 = vsel %vm528_vm9, %v4666_v35, %v4231_v11  ;;  %v2625_v35 = vld [vmem:[%s2765_s27] sm:$0xff] }
 0x613   : > { %v1769_v63 = vpop.permute.xlu1 %1768  ;;  %2530 = vmatprep.subr.msk.mxu0 %vm2887_vm7, %v4024_v61 }
 0x614   : > { %v1777_v53 = vsel %vm502_vm12, %v1767_v8, %v1769_v63  ;;  %2531 = vmatpush1.msk.msra.mxu0 %vm2894_vm8, %v1818_v34  ;;  %v1770_v8 = vsel %vm502_vm12, %v3989_v28, %v3995_v22  ;;  %v2010_v22 = vsel %vm567_vm13, %v3997_v3, %v4002_v57  ;;  %v1293_v3 = vpop.f32.mrf.mxu1  ;;  %v2095_v57 = vsel %vm589_vm5, %v4188_v49, %v4134_v60 }
 0x615   : > { %2532 = vmatprep.subr.msk.mxu0 %vm2871_vm3, %v1777_v53  ;;  %v4256_v42 = vpop.permute.xlu0 %2046  ;;  %v2090_v60 = vsel %vm589_vm5, %v4004_v4, %v4047_v45  ;;  %v4660_v45 = vld [vmem:[#allocation26_spill] sm:$0xff]  ;;  %v4669_v53 = vld [vmem:[#allocation16_spill] sm:$0xff] }
 0x616   : > { %2533 = vmatpush1.msk.msra.mxu0 %vm2878_vm4, %v1776_v16  ;;  %v4670_v16 = vld [vmem:[#allocation6_spill] sm:$0xff] }
 0x617   : > { %v4252_v24 = vpop.permute.xlu1 %1956  ;;  %2534 = vmatprep.subr.msk.mxu0 %vm2871_vm3, %v1775_v13  ;;  %v1866_v13 = vsel %vm528_vm9, %v4670_v16, %v4669_v53 }
 0x618   : > { %2535 = vmatpush1.msk.msra.mxu0 %vm2878_vm4, %v1774_v48  ;;  %v1920_v48 = vsel %vm541_vm6, %v4163_v38, %v4208_v0  ;;  %v4661_v38 = vld [vmem:[#allocation14_spill] sm:$0xff] }
 0x619   : > { %2536 = vmatprep.subr.msk.mxu0 %vm2871_vm3, %v4116_v36  ;;  %v2016_v36 = vsel %vm567_vm13, %v2005_v50, %v2007_v10  ;;  %v4276_v20 = vpop.permute.xlu0 %1960 }
 0x61a   : > { %2537 = vmatpush1.msk.msra.mxu0 %vm2878_vm4, %v4090_v19  ;;  %v2015_v19 = vsel %vm567_vm13, %v4127_v25, %v2003_v27 }
 0x61b   : > { %v2009_v61 = vpop.permute.xlu1 %2008  ;;  %2538 = vmatprep.subr.msk.mxu0 %vm2871_vm3, %v4035_v59 }
 0x61c   : > { %2539 = vmatpush1.msk.msra.mxu0 %vm2878_vm4, %v1770_v8  ;;  %v2017_v2 = vsel %vm567_vm13, %v2007_v10, %v2009_v61  ;;  %v4671_v61 = vld [vmem:[#allocation19_spill] sm:$0xff] }
 0x61d   : > { %2133 = vmatprep.subr.mxu0 %v2017_v2  ;;  %v4291_v10 = vpop.permute.xlu0 %2026 }
 0x61e   : > { %2134 = vmatpush1.msra.mxu0 %v2016_v36  ;;  %v4672_v36 = vld [vmem:[#allocation18_spill] sm:$0xff] }
 0x61f   : > { %v4280_v28 = vpop.permute.xlu1 %1952  ;;  %2135 = vmatprep.subr.mxu0 %v2015_v19  ;;  %v2056_v19 = vsel %vm578_vm10, %v4672_v36, %v4256_v42 }
 0x620   : > { %2136 = vmatpush1.msra.mxu0 %v4167_v62  ;;  %v4663_v62 = vld [vmem:[#allocation11_spill] sm:$0xff] }
 0x621   : > { %2137 = vmatprep.subr.mxu0 %v4123_v21  ;;  %v4657_v21 = vld [vmem:[#allocation48_spill] sm:$0xff] }
 0x622   : > { %2138 = vmatpush1.msra.mxu0 %v4101_v47 }
 0x623   : > { %v4288_v59 = vpop.permute.xlu1 %2034  ;;  %2139 = vmatprep.subr.mxu0 %v4043_v32 }
 0x624   : > { %2140 = vmatpush1.msra.mxu0 %v2010_v22  ;;  %v4673_v22 = vld [vmem:[#allocation20_spill] sm:$0xff] }
 0x625   : > { %2540 = vmatprep.subr.msk.mxu0 %vm2887_vm7, %v3971_v23  ;;  %v4310_v23 = vpop.permute.xlu0 %1942 }
 0x626   : > { %2541 = vmatpush1.msk.msra.mxu0 %vm2894_vm8, %v3952_v7 }
 0x627   : > { %v4299_v27 = vpop.permute.xlu1 %1950  ;;  %2542 = vmatprep.subr.msk.mxu0 %vm2887_vm7, %v3929_v18 }
 0x628   : > { %2543 = vmatpush1.msk.msra.mxu0 %vm2894_vm8, %v3947_v37  ;;  %v1295_v37 = vpop.f32.mrf.mxu1 }
 0x629   : > { %2544 = vmatprep.subr.msk.mxu0 %vm2887_vm7, %v3902_v52  ;;  %v2096_v52 = vsel %vm589_vm5, %v4157_v15, %v4204_v51 }
 0x62a   : > { %2545 = vmatpush1.msk.msra.mxu0 %vm2894_vm8, %v3887_v43 }
 0x62b   : > { %v2089_v7 = vpop.permute.xlu1 %2088  ;;  %2546 = vmatprep.subr.msk.mxu0 %vm2887_vm7, %v3857_v17  ;;  %v2094_v17 = vsel %vm589_vm5, %v4173_v5, %v4188_v49  ;;  %v1914_v5 = vsel %vm541_vm6, %v4664_v56, %v4663_v62 }
 0x62c   : > { %2547 = vmatpush1.msk.msra.mxu0 %vm2894_vm8, %v3852_v39  ;;  %v2097_v18 = vsel %vm589_vm5, %v4204_v51, %v2089_v7  ;;  %v4658_v51 = vld [vmem:[#allocation51_spill] sm:$0xff]  ;;  %v4674_v7 = vld [vmem:[#allocation22_spill] sm:$0xff] }
 0x62d   : > { %2149 = vmatprep.subr.mxu0 %v2097_v18  ;;  %v2054_v18 = vsel %vm578_vm10, %v4674_v7, %v4222_v26 }
 0x62e   : > { %2150 = vmatpush2.msra.mxu0 %v2096_v52  ;;  %v1207_v43 = vpop.permute.xlu0 %1206 }
 0x62f   : > { %v1294_v39 = vadd.f32 %v1293_v3, %v1207_v43  ;;  %v1296_v32 = vadd.f32 %v1295_v37, %v1207_v43  ;;  %v4332_v47 = vpop.permute.xlu1 %1946  ;;  %2151 = vmatprep.subr.mxu0 %v2095_v57  ;;  %v2055_v3 = vsel %vm578_vm10, %v4222_v26, %v4673_v22  ;;  %v4675_v43 = vld [vmem:[#allocation25_spill] sm:$0xff] }
 0x630   : > { %2152 = vmatpush2.msra.mxu0 %v2094_v17  ;;  %v2053_v57 = vsel %vm578_vm10, %v4288_v59, %v4675_v43  ;;  %v4676_v17 = vld [vmem:[#allocation31_spill] sm:$0xff]  ;;  %v4677_v26 = vld [vmem:[#allocation29_spill] sm:$0xff] }
 0x631   : > { %v1365_v25 = vadd.f32 %v4657_v21, %v1294_v39  ;;  %v1367_v1 = vadd.f32 %v4658_v51, %v1296_v32  ;;  %2153 = vmatprep.subr.mxu0 %v4130_v30  ;;  %v2052_v39 = vsel %vm578_vm10, %v4676_v17, %v4288_v59  ;;  %v2665_v32 = vmov 1966171168  }
 0x632   : > { %2154 = vmatpush2.msra.mxu0 %v4085_v33  ;;  %v4659_v33 = vld [vmem:[#allocation23_spill] sm:$0xff]  ;;  %v2300_v21 = vunpack.c.l.s4 %v2665_v32  ;;  %v1966_v59 = vsel %vm554_vm2, %v4299_v27, %v4280_v28 }
 0x633   : > { %v2573_v12 = vmul.f32 -1.442695, %v1365_v25  ;;  %v2574_v49 = vmul.f32 -1.442695, %v1367_v1  ;;  %v1913_v29 = vpop.permute.xlu1 %1912  ;;  %2155 = vmatprep.subr.mxu0 %v4053_v6  ;;  %v1919_v4 = vsel %vm541_vm6, %v4659_v33, %v4141_v9  ;;  %v1918_v6 = vsel %vm541_vm6, %v4660_v45, %v4659_v33  ;;  %v4662_v9 = vld [vmem:[#allocation21_spill] sm:$0xff]  ;;  %v4678_v1 = vld [vmem:[#allocation27_spill] sm:$0xff] }
 0x634   : > { %v1921_v15 = vsel %vm541_vm6, %v4208_v0, %v1913_v29  ;;  %2156 = vmatpush2.msra.mxu0 %v2090_v60  ;;  %v4665_v0 = vld [vmem:[#allocation12_spill] sm:$0xff]  ;;  %v1965_v60 = vsel %vm554_vm2, %v4332_v47, %v4678_v1 }
 0x635   : > { %2617 = vpow2.f32 %v2573_v12  ;;  %2548 = vmatprep.subr.msk.mxu0 %vm2887_vm7, %v1921_v15  ;;  %v4680_v15 = vld [vmem:[#allocation9_spill] sm:$0xff] }
 0x636   : > { %2619 = vpow2.f32 %v2574_v49  ;;  %2549 = vmatpush2.msk.msra.mxu0 %vm2894_vm8, %v1920_v48 }
 0x637   : > { %v2029_v30 = vpop.permute.xlu1 %2028  ;;  %2550 = vmatprep.subr.msk.mxu0 %vm2887_vm7, %v1919_v4 }
 0x638   : > { %2551 = vmatpush2.msk.msra.mxu0 %vm2894_vm8, %v1918_v6  ;;  %v2050_v25 = vsel %vm578_vm10, %v4291_v10, %v2029_v30  ;;  %v2301_v10 = vunpack.c.0.s8 %v2300_v21  ;;  %v4682_v6 = vld [vmem:[#allocation7_spill] sm:$0xff] }
 0x639   : > { %2552 = vmatprep.subr.msk.mxu0 %vm2887_vm7, %v4661_v38 }
 0x63a   : > { %2553 = vmatpush2.msk.msra.mxu0 %vm2894_vm8, %v4662_v9  ;;  %v2304_v48 = vsub.s32 %v2301_v10, %v4680_v15 }
 0x63b   : > { %v1865_v50 = vpop.permute.xlu1 %1864  ;;  %2554 = vmatprep.subr.msk.mxu0 %vm2887_vm7, %v4665_v0 }
 0x63c   : > { %v1873_v44 = vsel %vm528_vm9, %v4231_v11, %v1865_v50  ;;  %2555 = vmatpush2.msk.msra.mxu0 %vm2894_vm8, %v1914_v5  ;;  %v4668_v11 = vld [vmem:[#allocation13_spill] sm:$0xff]  ;;  %v2286_v50 = vstv %s2575_s17 }
 0x63d   : > { %2556 = vmatprep.subr.msk.mxu0 %vm2871_vm3, %v1873_v44 }
 0x63e   : > { %2557 = vmatpush2.msk.msra.mxu0 %vm2878_vm4, %v1872_v31 }
 0x63f   : > { %v1945_v34 = vpop.permute.xlu1 %1944  ;;  %2558 = vmatprep.subr.msk.mxu0 %vm2871_vm3, %v4200_v55 }
 0x640   : > { %2559 = vmatpush2.msk.msra.mxu0 %vm2878_vm4, %v4197_v40 }
 0x641   : > { %2560 = vmatprep.subr.msk.mxu0 %vm2871_vm3, %v4667_v54 }
 0x642   : > { %v2618_v58 = vpop.eup %2617  ;;  %2561 = vmatpush2.msk.msra.mxu0 %vm2878_vm4, %v4668_v11 }
 0x643   : > { %v2620_v63 = vpop.eup %2619  ;;  %v2265_v8 = vadd.f32 1.0, %v2618_v58  ;;  %v2049_v55 = vpop.permute.xlu1 %2048  ;;  %2562 = vmatprep.subr.msk.mxu0 %vm2871_vm3, %v4671_v61  ;;  %v2283_v58 = vstv %s2271_s18 }
 0x644   : > { %v2266_v40 = vadd.f32 1.0, %v2620_v63  ;;  %2563 = vmatpush2.msk.msra.mxu0 %vm2878_vm4, %v1866_v13  ;;  %v2057_v2 = vsel %vm578_vm10, %v4256_v42, %v2049_v55 }
 0x645   : > { %2621 = vrcp.f32 %v2265_v8  ;;  %2173 = vmatprep.subr.mxu0 %v2057_v2 }
 0x646   : > { %2623 = vrcp.f32 %v2266_v40  ;;  %2174 = vmatpush2.msra.mxu0 %v2056_v19 }
 0x647   : > { %v1959_v37 = vpop.permute.xlu1 %1958  ;;  %2175 = vmatprep.subr.mxu0 %v2055_v3 }
 0x648   : > { %v1968_v52 = vsel %vm554_vm2, %v4252_v24, %v1959_v37  ;;  %v1969_v42 = vsel %vm554_vm2, %v1959_v37, %v4276_v20  ;;  %2176 = vmatpush2.msra.mxu0 %v2054_v18  ;;  %v1967_v24 = vsel %vm554_vm2, %v4280_v28, %v4677_v26  ;;  %v2051_v20 = vsel %vm578_vm10, %v2029_v30, %v4214_v14  ;;  %v4679_v28 = vld [vmem:[#allocation24_spill] sm:$0xff] }
 0x649   : > { %2177 = vmatprep.subr.mxu0 %v2053_v57  ;;  %2564 = vmatprep.subr.msk.mxu1 %vm2871_vm3, %v1969_v42  ;;  %v1964_v14 = vsel %vm554_vm2, %v1945_v34, %v4332_v47  ;;  %v1374_v47 = vld [vmem:[%s4488_s7 + $0x8] sm:$0xf]  ;;  %v4683_v34 = vld [vmem:[#allocation5_spill] sm:$0xff] }
 0x64a   : > { %2178 = vmatpush2.msra.mxu0 %v2052_v39  ;;  %2565 = vmatpush1.msk.msra.mxu1 %vm2878_vm4, %v1968_v52 }
 0x64b   : > { %v1941_v51 = vpop.permute.xlu1 %1940  ;;  %2179 = vmatprep.subr.mxu0 %v2051_v20  ;;  %2566 = vmatprep.subr.msk.mxu1 %vm2871_vm3, %v1967_v24 }
 0x64c   : > { %2180 = vmatpush2.msra.mxu0 %v2050_v25  ;;  %2567 = vmatpush1.msk.msra.mxu1 %vm2878_vm4, %v1966_v59  ;;  %v1963_v27 = vsel %vm554_vm2, %v1941_v51, %v4310_v23 }
 0x64d   : > { %2182 = vmatmul.mubr.f32.vlgmr.msra.gmra.mxu0 %v4679_v28  ;;  %2568 = vmatprep.subr.msk.mxu1 %vm2871_vm3, %v1965_v60 }
 0x64e   : > { %2569 = vmatpush1.msk.msra.mxu1 %vm2878_vm4, %v1964_v14 }
 0x64f   : > { %v1939_v12 = vpop.permute.xlu1 %1938  ;;  %2570 = vmatprep.subr.msk.mxu1 %vm2871_vm3, %v1963_v27 }
 0x650   : > { %v1962_v49 = vsel %vm554_vm2, %v1939_v12, %v1941_v51 }
 0x651   : > { %2571 = vmatpush1.msk.msra.mxu1 %vm2878_vm4, %v1962_v49 }
 0x652   : > { %v2622_v29 = vpop.eup %2621  ;;  %2572 = vmatmul.mubr.msk.f32.vlgmr.msra.gmra.mxu1 %vm1224_vm15, %v1374_v47 }
 0x653   : > { %v2624_v23 = vpop.eup %2623  ;;  %v2276_v30 = vrot.slane %v2622_v29, %v4682_v6 }
 0x654   : > { %v2298_v33 = vcombine.low %v2622_v29, %v2624_v23  ;;  %v2280_v38 = vrot.slane %v2624_v23, %v4682_v6 }
 0x655   : > { %v2281_v31 = vmul.f32 %v2625_v35, %v2276_v30 }
 0x656   : > { %v2305_v4 = vrot.slane %v2298_v33, %v2304_v48  ;;  %v2282_v54 = vmul.f32 %v2280_v38, %v4683_v34 }
 0x657   : > { %v2284_v16 = vmul.f32 %v2283_v58, %v2281_v31 }
 0x658   : > { %v2312_v45 = vrot.slane %v2305_v4, %v2304_v48  ;;  %v2285_v13 = vmul.f32 %v2283_v58, %v2282_v54 }
 0x65a   : > { %2318 = vst.msk [vmem:[%s377_s16] sm:$0x3] %vm2316_vm0, %v2312_v45 }
 0x65c   : > { %v2109_v9 = vpop.permute.xlu1 %2108 }
 0x70d   : > { %v2183_v46 = vpop.f32.mrf.mxu0 }
 0x70e   : > { %v2184_v56 = vadd.f32 %v2183_v46, %v2109_v9 }
 0x70f   : > { %v2185_v62 = vpop.f32.mrf.mxu0 }
 0x710   : > { %v2186_v0 = vadd.f32 %v2185_v62, %v2109_v9 }
 0x712   : > { %v2254_v5 = vpop.f32.mrf.mxu1 }
 0x713   : > { %v2255_v44 = vadd.f32 %v2254_v5, %v2184_v56 }
 0x714   : > { %v2256_v11 = vpop.f32.mrf.mxu1 }
 0x715   : > { %v2287_v63 = vmul.f32 %v2286_v50, %v2255_v44  ;;  %v2257_v53 = vadd.f32 %v2256_v11, %v2186_v0 }
 0x717   : > { %v2288_v8 = vmul.f32 %v2286_v50, %v2257_v53  ;;  %v2289_v55 = vadd.f32 %v2287_v63, %v2284_v16 }
 0x719   : > { %v2290_v61 = vadd.f32 %v2288_v8, %v2285_v13 }
 0x71b   : > { %v2293_v40 = vcombine.low %v2289_v55, %v2290_v61 }
 0x71d   : > { %2295 = vst [vmem:[%s373_s20] sm:$0xff] %v2293_v40 }
 0x71e PF: > { %s21_s30 = sadd.s32 1, %s2651_s30  }
 0x71f   : > { %p18_p1 = scmp.ge.s32.totalorder %s21_s30, 4  }
 0x721   :  { %20 = sbr.rel (!%p18_p1) target bundleno = 1 (0x1), region = 102 }
 0x726   :  { %2354 = vsyncpa [#allocation3], 1 }
 0x727   :  { %2356 = vsyncpa [#allocation3 + $0x1], 1 }

</bundles_post_ra>
